<compile_context>
chip_gen: v7x
topology: tpu7x:2x2x1
jax: 0.10.0
libtpu: 0.0.40
codegen_flags: <defaults>
</compile_context>

<pallas_src>
import math
import functools

import jax
import jax.numpy as jnp
from jax.experimental import pallas as pl
from jax.experimental.pallas import tpu as pltpu


def _cdiv(a, b):
    return -(-a // b)


def _round_up(a, b):
    return _cdiv(a, b) * b


def _vmem_limit(block_elems):
    """Explicit scoped-VMEM limit: double-buffered f32 blocks + register headroom."""
    return int(min(64 * 2 ** 20, max(32 * 2 ** 20, 16 * int(block_elems))))


# Set to jnp.bfloat16 to trade a little precision for 2-4x MXU throughput
# (review suggestion); default float32 preserves the reference module numerics.
MXU_INPUT_DTYPE = jnp.float32


# ----------------------------------------------------------------------------
# Pallas kernel 1: fused nn_filter_Estimator (4 conv layers, k=3, same padding,
# ReLU between layers, fused cepstrum_scale * lowpass_mask on the final layer).
# Batch is folded into the lane axis (Np = B*Tp), so the grid is just the two
# branches and every layer is one large MXU matmul with weights loaded once.
# ----------------------------------------------------------------------------
def _estimator_kernel(x_ref, masks_ref, w0, b0, w1, b1, w2, b2, wf, bf, post, o_ref):
    # x_ref    : (C_in, Np)   mel features, batch folded into lanes (Np = B*Tp)
    # masks_ref: (3, Np)      row0: left-neighbour valid, row1: right, row2: t < T
    # w*       : (1, C_out, 3*C_in) im2col-folded weights (block-diag for grouped)
    # b*       : (1, C_out, 1)
    # post     : (1, ccep, 1) cepstrum_scale * lowpass_mask
    # o_ref    : (1, ccep, Np)
    Np = x_ref.shape[1]
    masks = masks_ref[...]
    mask_l = masks[0:1, :]
    mask_r = masks[1:2, :]
    tmask = masks[2:3, :]

    def conv(x, w_ref, b_ref, relu):
        # k=3 "same" conv as one MXU matmul; neighbours via XLU lane rolls, with the
        # circular-wrap / cross-batch seam lanes explicitly zeroed by the masks.
        xm = pltpu.roll(x, shift=1, axis=1) * mask_l        # x[t-1]
        xp = pltpu.roll(x, shift=Np - 1, axis=1) * mask_r   # x[t+1]
        xc = jnp.concatenate([xm, x, xp], axis=0)           # (3*C_in, Np), sublane-aligned
        y = jnp.dot(w_ref[0].astype(MXU_INPUT_DTYPE), xc.astype(MXU_INPUT_DTYPE),
                    preferred_element_type=jnp.float32) + b_ref[0]
        if relu:
            y = jnp.maximum(y, 0.0)
        return y * tmask           # keep padded frames (t >= T) exactly zero

    h = conv(x_ref[...], w0, b0, True)
    h = conv(h, w1, b1, True)
    h = conv(h, w2, b2, True)
    o_ref[0] = conv(h, wf, bf, False) * post[0]


def _fold_conv_weight(w):
    """(C_out, C_in, 3) -> (C_out, 3*C_in): [tap0 | tap1 | tap2] column blocks."""
    c_out, c_in, k = w.shape
    return jnp.transpose(w, (0, 2, 1)).reshape(c_out, k * c_in)


def _expand_grouped(w, groups):
    """Grouped conv weight (C_out, C_in//g, k) -> block-diagonal dense (C_out, C_in, k).

    TODO(synk): at production channel counts restructure as a grouped matmul
    instead of the 8x zero-filled dense expansion (fine at channels=32).
    """
    c_out, cpg_in, k = w.shape
    cpg_out = c_out // groups
    c_in = cpg_in * groups
    wd = jnp.zeros((c_out, c_in, k), w.dtype)
    for g in range(groups):
        wd = wd.at[g * cpg_out:(g + 1) * cpg_out,
                   g * cpg_in:(g + 1) * cpg_in, :].set(w[g * cpg_out:(g + 1) * cpg_out])
    return wd


def _stack_branch_weights(params, groups=8):
    def branch(p):
        return dict(
            w0=_fold_conv_weight(p["w0"]), b0=p["b0"][:, None],
            w1=_fold_conv_weight(_expand_grouped(p["w1"], groups)), b1=p["b1"][:, None],
            w2=_fold_conv_weight(_expand_grouped(p["w2"], groups)), b2=p["b2"][:, None],
            wf=_fold_conv_weight(p["wf"]), bf=p["bf"][:, None])
    s = branch(params["source"])
    n = branch(params["noise"])
    return {k: jnp.stack([s[k], n[k]]) for k in s}


def estimators_pallas(stacked, posts, feat):
    """feat: (B, C_in, T); returns ccep for both branches, shape (2, B, ccep, T)."""
    B, C_in, T = feat.shape
    ccep = stacked["wf"].shape[1]
    Tp = _round_up(T, 128)
    Np = B * Tp                                  # lane-dense folded batch*time axis

    featp = jnp.pad(feat, ((0, 0), (0, 0), (0, Tp - T)))
    feat_fold = jnp.transpose(featp, (1, 0, 2)).reshape(C_in, Np)

    t_idx = jnp.arange(Tp)
    masks = jnp.stack([
        (t_idx != 0).astype(jnp.float32),        # left neighbour exists
        (t_idx != Tp - 1).astype(jnp.float32),   # right neighbour exists
        (t_idx < T).astype(jnp.float32),         # valid frame
    ])
    masks = jnp.tile(masks, (1, B))              # (3, Np), per-batch segments

    weight_args = [stacked[k] for k in ("w0", "b0", "w1", "b1", "w2", "b2", "wf", "bf")]
    weight_args.append(posts)                    # (2, ccep, 1)

    in_specs = [pl.BlockSpec((C_in, Np), lambda s: (0, 0)),
                pl.BlockSpec((3, Np), lambda s: (0, 0))]
    for arr in weight_args:
        in_specs.append(pl.BlockSpec((1,) + arr.shape[1:], lambda s: (s, 0, 0)))

    # TODO(synk): for very long sequences / large batches tile the Np axis as well.
    block_elems = (C_in + 3 + ccep) * Np + sum(int(a.size) for a in weight_args)
    out = pl.pallas_call(
        _estimator_kernel,
        out_shape=jax.ShapeDtypeStruct((2, ccep, Np), jnp.float32),
        grid_spec=pltpu.PrefetchScalarGridSpec(
            num_scalar_prefetch=0,
            grid=(2,),
            in_specs=in_specs,
            out_specs=pl.BlockSpec((1, ccep, Np), lambda s: (s, 0, 0)),
        ),
        compiler_params=pltpu.CompilerParams(
            dimension_semantics=("parallel",),
            vmem_limit_bytes=_vmem_limit(block_elems)),
    )(feat_fold, masks, *weight_args)

    out = out.reshape(2, ccep, B, Tp)
    return jnp.transpose(out, (0, 2, 1, 3))[..., :T]


# ----------------------------------------------------------------------------
# Pallas kernel 2: linear time-varying FIR (ltv_fir), lane-dense + register
# accumulation.  Grid = (batch, T tiles); the T-tile axis is sequential and the
# overlap-add spill-over is carried across tiles in a small VMEM scratch.
# ----------------------------------------------------------------------------
def _ltv_fir_kernel(xf_ref, h_ref, o_ref, carry_ref, *, Tt, F, Lp, Ltile):
    # xf_ref   : (1, Tt, F)    framed source signal (one tile of one batch element)
    # h_ref    : (1, Tt, Lp)   per-frame impulse responses, zero padded Kir -> Lp
    # o_ref    : (1, 1, 1, Ltile) flat OLA output for this tile (Ltile = Tt*F, %128==0)
    # carry_ref: (1, Lp)       OLA spill-over into the next tile
    i = pl.program_id(1)

    @pl.when(i == 0)
    def _():
        carry_ref[...] = jnp.zeros_like(carry_ref)

    xt = xf_ref[0]                                    # (Tt, F)
    hp = h_ref[0]                                     # (Tt, Lp)

    # Per-frame convolution y[t, n] = sum_j x[t, j] * h[t, n-j]: register
    # accumulation with F XLU lane-rolls of h + VALU FMAs (no VMEM RMW scratch).
    # TODO(synk): for very large F (>128) switch to a blocked fori_loop body.
    acc = xt[:, 0:1] * hp
    for j in range(1, F):
        acc = acc + xt[:, j:j + 1] * pltpu.roll(hp, shift=j, axis=1)

    # Overlap-add: place frame t at lane offset t*F of a flat (1, Ltile+Lp) row
    # using aligned concatenation + a lane roll (non-zero data never wraps since
    # t*F + Lp <= Ltile + Lp).  Everything stays in registers; one aligned store.
    zero_tail = jnp.zeros((1, Ltile), jnp.float32)
    full = jnp.zeros((1, Ltile + Lp), jnp.float32)
    for t in range(Tt):
        row = jnp.concatenate([acc[t:t + 1, :], zero_tail], axis=1)
        if t > 0:
            row = pltpu.roll(row, shift=t * F, axis=1)
        full = full + row

    carry_in = carry_ref[...]
    if Ltile > Lp:
        carry_in = jnp.concatenate(
            [carry_in, jnp.zeros((1, Ltile - Lp), jnp.float32)], axis=1)
    o_ref[0, 0] = full[:, :Ltile] + carry_in          # single lane-dense aligned store
    carry_ref[...] = full[:, Ltile:Ltile + Lp]


def ltv_fir_pallas(signal, filters, frame_size):
    """signal: (B, L); filters: (B, T, Kir) with T = L // frame_size."""
    B, L = signal.shape
    _, T, Kir = filters.shape
    F = frame_size
    assert L == T * F
    Lp = _round_up(F + Kir - 1, 128)                 # lane-dense per-frame conv length
    unit = 128 // math.gcd(F, 128)                   # frames per 128-lane output chunk
    tt_min = _round_up(max(unit, _cdiv(Lp, F)), unit)  # carry must fit inside one tile
    tt_cap = _round_up(T, unit)
    Tt = max(tt_min, min(tt_cap, _round_up(512, unit)))
    Ltile = Tt * F
    assert Lp <= Ltile
    nT = _cdiv(T, Tt)
    Tpad = nT * Tt

    xf = jnp.pad(signal.reshape(B, T, F), ((0, 0), (0, Tpad - T), (0, 0)))
    hp = jnp.pad(filters, ((0, 0), (0, Tpad - T), (0, Lp - Kir)))

    kern = functools.partial(_ltv_fir_kernel, Tt=Tt, F=F, Lp=Lp, Ltile=Ltile)
    block_elems = Tt * F + Tt * Lp + Ltile + Lp + Tt * Lp + (Ltile + Lp)
    y = pl.pallas_call(
        kern,
        out_shape=jax.ShapeDtypeStruct((B, nT, 1, Ltile), jnp.float32),
        grid_spec=pltpu.PrefetchScalarGridSpec(
            num_scalar_prefetch=0,
            grid=(B, nT),
            in_specs=[
                pl.BlockSpec((1, Tt, F), lambda b, i: (b, i, 0)),
                pl.BlockSpec((1, Tt, Lp), lambda b, i: (b, i, 0)),
            ],
            out_specs=pl.BlockSpec((1, 1, 1, Ltile), lambda b, i: (b, i, 0, 0)),
            scratch_shapes=[pltpu.VMEM((1, Lp), jnp.float32)]),
        compiler_params=pltpu.CompilerParams(
            dimension_semantics=("parallel", "arbitrary"),
            vmem_limit_bytes=_vmem_limit(block_elems)),
    )(xf, hp)
    return y.reshape(B, nT * Ltile)[:, :L]


# ----------------------------------------------------------------------------
# Pallas kernel 3: trainable FIR reverb as ONE MXU matmul per tile against a
# blocked Toeplitz FIR matrix (K = C2*Fr, 256 on v6e/v7x-friendly shapes); the
# nF (frame) axis is tiled with a look-back carry of the previous C2-1 frames.
# ----------------------------------------------------------------------------
def _reverb_kernel(xf_ref, toep_ref, o_ref, carry_ref, *, Ft, Fr, C2):
    # xf_ref   : (1, Ft, Fr)   input frames of this tile
    # toep_ref : (C2*Fr, Fr)   blocked Toeplitz FIR matrix
    # o_ref    : (1, Ft, Fr)
    # carry_ref: (C2-1, Fr)    last C2-1 input frames of the previous tile
    i = pl.program_id(1)

    @pl.when(i == 0)
    def _():
        carry_ref[...] = jnp.zeros_like(carry_ref)

    x_tile = xf_ref[0]                                           # (Ft, Fr)
    xfull = jnp.concatenate([carry_ref[...], x_tile], axis=0)    # (Ft + C2 - 1, Fr)
    wide = jnp.concatenate([xfull[d:d + Ft, :] for d in range(C2)], axis=1)
    o_ref[0] = jnp.dot(wide.astype(MXU_INPUT_DTYPE),
                       toep_ref[...].astype(MXU_INPUT_DTYPE),
                       preferred_element_type=jnp.float32)
    carry_ref[...] = x_tile[Ft - (C2 - 1):, :]


def _build_reverb_toeplitz(fir, Fr, C2):
    """toep[d*Fr + r', r] = fir[(C2-1-d)*Fr + r - r'] (0 where out of range)."""
    R = fir.shape[0]
    rows = jnp.arange(C2 * Fr)
    d = rows // Fr
    rp = rows % Fr
    r = jnp.arange(Fr)[None, :]
    m = (C2 - 1 - d)[:, None] * Fr + r - rp[:, None]
    valid = (m >= 0) & (m < R)
    return jnp.where(valid, fir[jnp.clip(m, 0, R - 1)], 0.0).astype(jnp.float32)


def fir_reverb_pallas(x, fir, frame=128):
    """x: (B, L); fir: (R,) learned causal impulse response. Same output length."""
    B, L = x.shape
    R = int(fir.shape[0])
    Fr = frame
    C2 = max(2, _cdiv(Fr + R - 1, Fr))          # Fr-wide Toeplitz blocks (>=2)
    nF = _cdiv(L, Fr)
    Ft = max(min(nF, 512), C2 - 1)              # frames per tile (carry spans 1 tile)
    nTiles = _cdiv(nF, Ft)
    nFp = nTiles * Ft

    xp = jnp.pad(x, ((0, 0), (0, nFp * Fr - L)))
    xf = xp.reshape(B, nFp, Fr)
    toep = _build_reverb_toeplitz(fir, Fr, C2)   # (C2*Fr, Fr)

    kern = functools.partial(_reverb_kernel, Ft=Ft, Fr=Fr, C2=C2)
    block_elems = 2 * Ft * Fr + C2 * Fr * Fr + C2 * Ft * Fr + (C2 - 1) * Fr
    y = pl.pallas_call(
        kern,
        out_shape=jax.ShapeDtypeStruct((B, nFp, Fr), jnp.float32),
        grid_spec=pltpu.PrefetchScalarGridSpec(
            num_scalar_prefetch=0,
            grid=(B, nTiles),
            in_specs=[
                pl.BlockSpec((1, Ft, Fr), lambda b, i: (b, i, 0)),
                pl.BlockSpec((C2 * Fr, Fr), lambda b, i: (0, 0)),
            ],
            out_specs=pl.BlockSpec((1, Ft, Fr), lambda b, i: (b, i, 0)),
            scratch_shapes=[pltpu.VMEM((C2 - 1, Fr), jnp.float32)]),
        compiler_params=pltpu.CompilerParams(
            dimension_semantics=("parallel", "arbitrary"),
            vmem_limit_bytes=_vmem_limit(block_elems)),
    )(xf, toep)
    return y.reshape(B, nFp * Fr)[:, :L]


# ----------------------------------------------------------------------------
# Plain-JAX glue (FFT-based cepstrum -> impulse, source generation, params).
# ----------------------------------------------------------------------------
def complex_cepstrum_to_imp(ccep, fft_size, dim=1):
    # TODO(synk): FFT has no Pallas/Mosaic primitive; stays in jnp.fft.
    B, C, T = ccep.shape
    pad = jnp.zeros((B, fft_size - C, T), ccep.dtype)
    ccep_pad = jnp.concatenate([ccep, pad], axis=dim)
    spec = jnp.exp(jnp.fft.fft(ccep_pad, axis=dim))
    imp = jnp.fft.ifft(spec, axis=dim).real
    return imp.astype(jnp.float32)


def generate_impulse_train(f0, n_harmonic, sampling_rate, source_amp):
    phase = 2.0 * jnp.pi * jnp.cumsum(f0, axis=-1) / sampling_rate
    k = jnp.arange(1, n_harmonic + 1, dtype=jnp.float32)[None, None, :]
    harmonics = jnp.sin(phase[..., None] * k)
    voiced = (f0 > 0.0).astype(jnp.float32)
    return source_amp * harmonics.mean(axis=-1) * voiced


def _init_conv(key, c_out, c_in_per_group, ksize):
    kw, kb = jax.random.split(key)
    w = 0.01 * jax.random.normal(kw, (c_out, c_in_per_group, ksize), jnp.float32)
    bound = 1.0 / math.sqrt(c_in_per_group * ksize)
    b = jax.random.uniform(kb, (c_out,), jnp.float32, -bound, bound)
    return w, b


def init_generator_params(key, n_mels, channels, ccep_size, reverb_length):
    # weight_norm is a pure reparametrization; forward math is identical.
    ks = jax.random.split(key, 9)
    params = {}
    for name, base in (("source", 0), ("noise", 4)):
        p = {}
        p["w0"], p["b0"] = _init_conv(ks[base + 0], channels, n_mels, 3)
        p["w1"], p["b1"] = _init_conv(ks[base + 1], channels, channels // 8, 3)
        p["w2"], p["b2"] = _init_conv(ks[base + 2], channels, channels // 8, 3)
        p["wf"], p["bf"] = _init_conv(ks[base + 3], ccep_size, channels, 3)
        params[name] = p
    decay = jnp.exp(-jnp.arange(reverb_length - 1, dtype=jnp.float32) / (reverb_length / 4.0))
    tail = 0.05 * jax.random.normal(ks[8], (reverb_length - 1,), jnp.float32) * decay
    params["reverb_fir"] = jnp.concatenate([jnp.ones((1,), jnp.float32), tail])
    return params


def generator_forward(params, feat, pitch, noise_key, *, frame_length, fft_size,
                      ccep_size, max_quefrency, harmonic_num, sampling_rate,
                      sine_amp, noise_std):
    # minimum-phase complex-cepstrum scaling [1, 2, 2, ...] and quefrency low-pass mask
    scale = jnp.concatenate([jnp.ones((1,), jnp.float32),
                             2.0 * jnp.ones((ccep_size - 1,), jnp.float32)])
    mask = (jnp.arange(ccep_size) < max_quefrency).astype(jnp.float32)
    post = scale * mask
    posts = jnp.stack([post, post])[..., None]        # (2, ccep, 1)

    stacked = _stack_branch_weights(params)
    ccep_both = estimators_pallas(stacked, posts, feat)              # (2, B, ccep, T)
    source_impulse = complex_cepstrum_to_imp(ccep_both[0], fft_size)  # (B, fft, T)
    noise_impulse = complex_cepstrum_to_imp(ccep_both[1], fft_size)

    f0 = jnp.repeat(pitch, frame_length, axis=-1)                     # (B, L)
    source_train = generate_impulse_train(f0, harmonic_num, sampling_rate, sine_amp)
    source_noise = noise_std * jax.random.normal(noise_key, f0.shape, jnp.float32)

    filt_src = ltv_fir_pallas(source_train,
                              jnp.transpose(source_impulse, (0, 2, 1)), frame_length)
    filt_noi = ltv_fir_pallas(source_noise,
                              jnp.transpose(noise_impulse, (0, 2, 1)), frame_length)

    out = fir_reverb_pallas(filt_src + filt_noi, params["reverb_fir"])
    return out


if __name__ == "__main__":
    # small shapes consistent with the module structure
    B, N_MELS, T_FRAMES = 2, 16, 8
    CHANNELS, CCEP_SIZE, FFT_SIZE = 32, 32, 64
    FRAME_LENGTH = 16
    MAX_QUEFRENCY = 8
    HARMONIC_NUM = 4
    SAMPLING_RATE = 22050
    SINE_AMP, NOISE_STD = 0.1, 0.003
    REVERB_LENGTH = 32

    key = jax.random.PRNGKey(0)
    kp, kf, kpitch, knoise = jax.random.split(key, 4)
    params = init_generator_params(kp, N_MELS, CHANNELS, CCEP_SIZE, REVERB_LENGTH)

    feat = jax.random.normal(kf, (B, N_MELS, T_FRAMES), jnp.float32)       # (B, n_mels, T)
    pitch = jax.random.uniform(kpitch, (B, T_FRAMES), jnp.float32, 80.0, 250.0)

    out = generator_forward(
        params, feat, pitch, knoise,
        frame_length=FRAME_LENGTH, fft_size=FFT_SIZE, ccep_size=CCEP_SIZE,
        max_quefrency=MAX_QUEFRENCY, harmonic_num=HARMONIC_NUM,
        sampling_rate=SAMPLING_RATE, sine_amp=SINE_AMP, noise_std=NOISE_STD)
    out = jax.block_until_ready(out)

    assert out.shape == (B, T_FRAMES * FRAME_LENGTH), out.shape
    assert bool(jnp.all(jnp.isfinite(out)))
    print("KERNEL_OK")
</pallas_src>

<mosaic_0001>
module attributes {stable_mosaic.version = 11 : i64} {
  func.func @_estimator_kernel(%arg0: i32, %arg1: memref<16x256xf32, #tpu.memory_space<vmem>>, %arg2: memref<3x256xf32, #tpu.memory_space<vmem>>, %arg3: memref<1x32x48xf32, #tpu.memory_space<vmem>>, %arg4: memref<1x32x1xf32, #tpu.memory_space<vmem>>, %arg5: memref<1x32x96xf32, #tpu.memory_space<vmem>>, %arg6: memref<1x32x1xf32, #tpu.memory_space<vmem>>, %arg7: memref<1x32x96xf32, #tpu.memory_space<vmem>>, %arg8: memref<1x32x1xf32, #tpu.memory_space<vmem>>, %arg9: memref<1x32x96xf32, #tpu.memory_space<vmem>>, %arg10: memref<1x32x1xf32, #tpu.memory_space<vmem>>, %arg11: memref<1x32x1xf32, #tpu.memory_space<vmem>>, %arg12: memref<1x32x256xf32, #tpu.memory_space<vmem>>) attributes {dimension_semantics = [#tpu.dimension_semantics<parallel>], iteration_bounds = array<i64: 2>, scalar_prefetch = 0 : i64, scratch_operands = 0 : i64, tpu.core_type = #tpu.core_type<tc>, window_params = [{pipeline_mode = #tpu.pipeline_mode<synchronous>, transform_indices = @transform_0, window_bounds = array<i64: 16, 256>}, {pipeline_mode = #tpu.pipeline_mode<synchronous>, transform_indices = @transform_1, window_bounds = array<i64: 3, 256>}, {transform_indices = @transform_2, window_bounds = array<i64: 1, 32, 48>}, {transform_indices = @transform_3, window_bounds = array<i64: 1, 32, 1>}, {transform_indices = @transform_4, window_bounds = array<i64: 1, 32, 96>}, {transform_indices = @transform_5, window_bounds = array<i64: 1, 32, 1>}, {transform_indices = @transform_6, window_bounds = array<i64: 1, 32, 96>}, {transform_indices = @transform_7, window_bounds = array<i64: 1, 32, 1>}, {transform_indices = @transform_8, window_bounds = array<i64: 1, 32, 96>}, {transform_indices = @transform_9, window_bounds = array<i64: 1, 32, 1>}, {transform_indices = @transform_10, window_bounds = array<i64: 1, 32, 1>}, {transform_indices = @transform_11, window_bounds = array<i64: 1, 32, 256>}]} {
    %c0 = arith.constant 0 : index
    %c0_0 = arith.constant 0 : index
    %0 = vector.load %arg2[%c0, %c0_0] : memref<3x256xf32, #tpu.memory_space<vmem>>, vector<3x256xf32>
    %1 = vector.extract_strided_slice %0 {offsets = [0, 0], sizes = [1, 256], strides = [1, 1]} : vector<3x256xf32> to vector<1x256xf32>
    %2 = vector.extract_strided_slice %0 {offsets = [1, 0], sizes = [1, 256], strides = [1, 1]} : vector<3x256xf32> to vector<1x256xf32>
    %3 = vector.extract_strided_slice %0 {offsets = [2, 0], sizes = [1, 256], strides = [1, 1]} : vector<3x256xf32> to vector<1x256xf32>
    %c0_1 = arith.constant 0 : index
    %c0_2 = arith.constant 0 : index
    %4 = vector.load %arg1[%c0_1, %c0_2] : memref<16x256xf32, #tpu.memory_space<vmem>>, vector<16x256xf32>
    %c1_i32 = arith.constant 1 : i32
    %5 = tpu.dynamic_rotate %4 by %c1_i32 dim 1 : vector<16x256xf32>, i32 -> vector<16x256xf32>
    %6 = vector.broadcast %1 : vector<1x256xf32> to vector<16x256xf32>
    %7 = arith.mulf %5, %6 : vector<16x256xf32>
    %c255_i32 = arith.constant 255 : i32
    %8 = tpu.dynamic_rotate %4 by %c255_i32 dim 1 : vector<16x256xf32>, i32 -> vector<16x256xf32>
    %9 = vector.broadcast %2 : vector<1x256xf32> to vector<16x256xf32>
    %10 = arith.mulf %8, %9 : vector<16x256xf32>
    %11 = tpu.concatenate %7, %4, %10 in 0 : vector<16x256xf32>, vector<16x256xf32>, vector<16x256xf32> -> vector<48x256xf32>
    %c0_3 = arith.constant 0 : index
    %c0_4 = arith.constant 0 : index
    %c0_5 = arith.constant 0 : index
    %12 = vector.load %arg3[%c0_3, %c0_4, %c0_5] : memref<1x32x48xf32, #tpu.memory_space<vmem>>, vector<1x32x48xf32>
    %13 = vector.shape_cast %12 : vector<1x32x48xf32> to vector<32x48xf32>
    %cst = arith.constant dense<0.000000e+00> : vector<32x256xf32>
    %14 = tpu.matmul %13, %11, %cst {dimension_numbers = #tpu.dot_dimension_numbers<[1], [0], [0], [1], [0, 0, 1, 1], [], []>} : vector<32x48xf32>, vector<48x256xf32>, vector<32x256xf32> -> vector<32x256xf32>
    %c0_6 = arith.constant 0 : index
    %c0_7 = arith.constant 0 : index
    %c0_8 = arith.constant 0 : index
    %15 = vector.load %arg4[%c0_6, %c0_7, %c0_8] : memref<1x32x1xf32, #tpu.memory_space<vmem>>, vector<1x32x1xf32>
    %16 = vector.shape_cast %15 : vector<1x32x1xf32> to vector<32x1xf32>
    %17 = vector.broadcast %16 : vector<32x1xf32> to vector<32x256xf32>
    %18 = arith.addf %14, %17 : vector<32x256xf32>
    %cst_9 = arith.constant 0.000000e+00 : f32
    %19 = vector.broadcast %cst_9 : f32 to vector<32x256xf32>
    %20 = arith.maximumf %18, %19 : vector<32x256xf32>
    %21 = vector.broadcast %3 : vector<1x256xf32> to vector<32x256xf32>
    %22 = arith.mulf %20, %21 : vector<32x256xf32>
    %c1_i32_10 = arith.constant 1 : i32
    %23 = tpu.dynamic_rotate %22 by %c1_i32_10 dim 1 : vector<32x256xf32>, i32 -> vector<32x256xf32>
    %24 = vector.broadcast %1 : vector<1x256xf32> to vector<32x256xf32>
    %25 = arith.mulf %23, %24 : vector<32x256xf32>
    %c255_i32_11 = arith.constant 255 : i32
    %26 = tpu.dynamic_rotate %22 by %c255_i32_11 dim 1 : vector<32x256xf32>, i32 -> vector<32x256xf32>
    %27 = vector.broadcast %2 : vector<1x256xf32> to vector<32x256xf32>
    %28 = arith.mulf %26, %27 : vector<32x256xf32>
    %29 = tpu.concatenate %25, %22, %28 in 0 : vector<32x256xf32>, vector<32x256xf32>, vector<32x256xf32> -> vector<96x256xf32>
    %c0_12 = arith.constant 0 : index
    %c0_13 = arith.constant 0 : index
    %c0_14 = arith.constant 0 : index
    %30 = vector.load %arg5[%c0_12, %c0_13, %c0_14] : memref<1x32x96xf32, #tpu.memory_space<vmem>>, vector<1x32x96xf32>
    %31 = vector.shape_cast %30 : vector<1x32x96xf32> to vector<32x96xf32>
    %cst_15 = arith.constant dense<0.000000e+00> : vector<32x256xf32>
    %32 = tpu.matmul %31, %29, %cst_15 {dimension_numbers = #tpu.dot_dimension_numbers<[1], [0], [0], [1], [0, 0, 1, 1], [], []>} : vector<32x96xf32>, vector<96x256xf32>, vector<32x256xf32> -> vector<32x256xf32>
    %c0_16 = arith.constant 0 : index
    %c0_17 = arith.constant 0 : index
    %c0_18 = arith.constant 0 : index
    %33 = vector.load %arg6[%c0_16, %c0_17, %c0_18] : memref<1x32x1xf32, #tpu.memory_space<vmem>>, vector<1x32x1xf32>
    %34 = vector.shape_cast %33 : vector<1x32x1xf32> to vector<32x1xf32>
    %35 = vector.broadcast %34 : vector<32x1xf32> to vector<32x256xf32>
    %36 = arith.addf %32, %35 : vector<32x256xf32>
    %cst_19 = arith.constant 0.000000e+00 : f32
    %37 = vector.broadcast %cst_19 : f32 to vector<32x256xf32>
    %38 = arith.maximumf %36, %37 : vector<32x256xf32>
    %39 = vector.broadcast %3 : vector<1x256xf32> to vector<32x256xf32>
    %40 = arith.mulf %38, %39 : vector<32x256xf32>
    %c1_i32_20 = arith.constant 1 : i32
    %41 = tpu.dynamic_rotate %40 by %c1_i32_20 dim 1 : vector<32x256xf32>, i32 -> vector<32x256xf32>
    %42 = vector.broadcast %1 : vector<1x256xf32> to vector<32x256xf32>
    %43 = arith.mulf %41, %42 : vector<32x256xf32>
    %c255_i32_21 = arith.constant 255 : i32
    %44 = tpu.dynamic_rotate %40 by %c255_i32_21 dim 1 : vector<32x256xf32>, i32 -> vector<32x256xf32>
    %45 = vector.broadcast %2 : vector<1x256xf32> to vector<32x256xf32>
    %46 = arith.mulf %44, %45 : vector<32x256xf32>
    %47 = tpu.concatenate %43, %40, %46 in 0 : vector<32x256xf32>, vector<32x256xf32>, vector<32x256xf32> -> vector<96x256xf32>
    %c0_22 = arith.constant 0 : index
    %c0_23 = arith.constant 0 : index
    %c0_24 = arith.constant 0 : index
    %48 = vector.load %arg7[%c0_22, %c0_23, %c0_24] : memref<1x32x96xf32, #tpu.memory_space<vmem>>, vector<1x32x96xf32>
    %49 = vector.shape_cast %48 : vector<1x32x96xf32> to vector<32x96xf32>
    %cst_25 = arith.constant dense<0.000000e+00> : vector<32x256xf32>
    %50 = tpu.matmul %49, %47, %cst_25 {dimension_numbers = #tpu.dot_dimension_numbers<[1], [0], [0], [1], [0, 0, 1, 1], [], []>} : vector<32x96xf32>, vector<96x256xf32>, vector<32x256xf32> -> vector<32x256xf32>
    %c0_26 = arith.constant 0 : index
    %c0_27 = arith.constant 0 : index
    %c0_28 = arith.constant 0 : index
    %51 = vector.load %arg8[%c0_26, %c0_27, %c0_28] : memref<1x32x1xf32, #tpu.memory_space<vmem>>, vector<1x32x1xf32>
    %52 = vector.shape_cast %51 : vector<1x32x1xf32> to vector<32x1xf32>
    %53 = vector.broadcast %52 : vector<32x1xf32> to vector<32x256xf32>
    %54 = arith.addf %50, %53 : vector<32x256xf32>
    %cst_29 = arith.constant 0.000000e+00 : f32
    %55 = vector.broadcast %cst_29 : f32 to vector<32x256xf32>
    %56 = arith.maximumf %54, %55 : vector<32x256xf32>
    %57 = vector.broadcast %3 : vector<1x256xf32> to vector<32x256xf32>
    %58 = arith.mulf %56, %57 : vector<32x256xf32>
    %c1_i32_30 = arith.constant 1 : i32
    %59 = tpu.dynamic_rotate %58 by %c1_i32_30 dim 1 : vector<32x256xf32>, i32 -> vector<32x256xf32>
    %60 = vector.broadcast %1 : vector<1x256xf32> to vector<32x256xf32>
    %61 = arith.mulf %59, %60 : vector<32x256xf32>
    %c255_i32_31 = arith.constant 255 : i32
    %62 = tpu.dynamic_rotate %58 by %c255_i32_31 dim 1 : vector<32x256xf32>, i32 -> vector<32x256xf32>
    %63 = vector.broadcast %2 : vector<1x256xf32> to vector<32x256xf32>
    %64 = arith.mulf %62, %63 : vector<32x256xf32>
    %65 = tpu.concatenate %61, %58, %64 in 0 : vector<32x256xf32>, vector<32x256xf32>, vector<32x256xf32> -> vector<96x256xf32>
    %c0_32 = arith.constant 0 : index
    %c0_33 = arith.constant 0 : index
    %c0_34 = arith.constant 0 : index
    %66 = vector.load %arg9[%c0_32, %c0_33, %c0_34] : memref<1x32x96xf32, #tpu.memory_space<vmem>>, vector<1x32x96xf32>
    %67 = vector.shape_cast %66 : vector<1x32x96xf32> to vector<32x96xf32>
    %cst_35 = arith.constant dense<0.000000e+00> : vector<32x256xf32>
    %68 = tpu.matmul %67, %65, %cst_35 {dimension_numbers = #tpu.dot_dimension_numbers<[1], [0], [0], [1], [0, 0, 1, 1], [], []>} : vector<32x96xf32>, vector<96x256xf32>, vector<32x256xf32> -> vector<32x256xf32>
    %c0_36 = arith.constant 0 : index
    %c0_37 = arith.constant 0 : index
    %c0_38 = arith.constant 0 : index
    %69 = vector.load %arg10[%c0_36, %c0_37, %c0_38] : memref<1x32x1xf32, #tpu.memory_space<vmem>>, vector<1x32x1xf32>
    %70 = vector.shape_cast %69 : vector<1x32x1xf32> to vector<32x1xf32>
    %71 = vector.broadcast %70 : vector<32x1xf32> to vector<32x256xf32>
    %72 = arith.addf %68, %71 : vector<32x256xf32>
    %73 = vector.broadcast %3 : vector<1x256xf32> to vector<32x256xf32>
    %74 = arith.mulf %72, %73 : vector<32x256xf32>
    %c0_39 = arith.constant 0 : index
    %c0_40 = arith.constant 0 : index
    %c0_41 = arith.constant 0 : index
    %75 = vector.load %arg11[%c0_39, %c0_40, %c0_41] : memref<1x32x1xf32, #tpu.memory_space<vmem>>, vector<1x32x1xf32>
    %76 = vector.shape_cast %75 : vector<1x32x1xf32> to vector<32x1xf32>
    %77 = vector.broadcast %76 : vector<32x1xf32> to vector<32x256xf32>
    %78 = arith.mulf %74, %77 : vector<32x256xf32>
    %c0_42 = arith.constant 0 : index
    %c0_43 = arith.constant 0 : index
    %c0_44 = arith.constant 0 : index
    %79 = vector.load %arg12[%c0_42, %c0_43, %c0_44] : memref<1x32x256xf32, #tpu.memory_space<vmem>>, vector<1x32x256xf32>
    %80 = vector.shape_cast %79 : vector<1x32x256xf32> to vector<32x256xf32>
    %81 = vector.shape_cast %78 : vector<32x256xf32> to vector<1x32x256xf32>
    tpu.vector_store %arg12[%c0_42, %c0_43, %c0_44], %81 {strides = array<i32>} : memref<1x32x256xf32, #tpu.memory_space<vmem>>, vector<1x32x256xf32>,
    return
  }
  func.func @transform_0(%arg0: i32) -> (i32, i32) {
    %c0_i32 = arith.constant 0 : i32
    %c0_i32_0 = arith.constant 0 : i32
    %c0_i32_1 = arith.constant 0 : i32
    return %c0_i32, %c0_i32_0 : i32, i32
  }
  func.func @transform_1(%arg0: i32) -> (i32, i32) {
    %c0_i32 = arith.constant 0 : i32
    %c0_i32_0 = arith.constant 0 : i32
    %c0_i32_1 = arith.constant 0 : i32
    return %c0_i32, %c0_i32_0 : i32, i32
  }
  func.func @transform_2(%arg0: i32) -> (i32, i32, i32) {
    %c0_i32 = arith.constant 0 : i32
    %c0_i32_0 = arith.constant 0 : i32
    %c0_i32_1 = arith.constant 0 : i32
    return %arg0, %c0_i32, %c0_i32_0 : i32, i32, i32
  }
  func.func @transform_3(%arg0: i32) -> (i32, i32, i32) {
    %c0_i32 = arith.constant 0 : i32
    %c0_i32_0 = arith.constant 0 : i32
    %c0_i32_1 = arith.constant 0 : i32
    return %arg0, %c0_i32, %c0_i32_0 : i32, i32, i32
  }
  func.func @transform_4(%arg0: i32) -> (i32, i32, i32) {
    %c0_i32 = arith.constant 0 : i32
    %c0_i32_0 = arith.constant 0 : i32
    %c0_i32_1 = arith.constant 0 : i32
    return %arg0, %c0_i32, %c0_i32_0 : i32, i32, i32
  }
  func.func @transform_5(%arg0: i32) -> (i32, i32, i32) {
    %c0_i32 = arith.constant 0 : i32
    %c0_i32_0 = arith.constant 0 : i32
    %c0_i32_1 = arith.constant 0 : i32
    return %arg0, %c0_i32, %c0_i32_0 : i32, i32, i32
  }
  func.func @transform_6(%arg0: i32) -> (i32, i32, i32) {
    %c0_i32 = arith.constant 0 : i32
    %c0_i32_0 = arith.constant 0 : i32
    %c0_i32_1 = arith.constant 0 : i32
    return %arg0, %c0_i32, %c0_i32_0 : i32, i32, i32
  }
  func.func @transform_7(%arg0: i32) -> (i32, i32, i32) {
    %c0_i32 = arith.constant 0 : i32
    %c0_i32_0 = arith.constant 0 : i32
    %c0_i32_1 = arith.constant 0 : i32
    return %arg0, %c0_i32, %c0_i32_0 : i32, i32, i32
  }
  func.func @transform_8(%arg0: i32) -> (i32, i32, i32) {
    %c0_i32 = arith.constant 0 : i32
    %c0_i32_0 = arith.constant 0 : i32
    %c0_i32_1 = arith.constant 0 : i32
    return %arg0, %c0_i32, %c0_i32_0 : i32, i32, i32
  }
  func.func @transform_9(%arg0: i32) -> (i32, i32, i32) {
    %c0_i32 = arith.constant 0 : i32
    %c0_i32_0 = arith.constant 0 : i32
    %c0_i32_1 = arith.constant 0 : i32
    return %arg0, %c0_i32, %c0_i32_0 : i32, i32, i32
  }
  func.func @transform_10(%arg0: i32) -> (i32, i32, i32) {
    %c0_i32 = arith.constant 0 : i32
    %c0_i32_0 = arith.constant 0 : i32
    %c0_i32_1 = arith.constant 0 : i32
    return %arg0, %c0_i32, %c0_i32_0 : i32, i32, i32
  }
  func.func @transform_11(%arg0: i32) -> (i32, i32, i32) {
    %c0_i32 = arith.constant 0 : i32
    %c0_i32_0 = arith.constant 0 : i32
    %c0_i32_1 = arith.constant 0 : i32
    return %arg0, %c0_i32, %c0_i32_0 : i32, i32, i32
  }
}

</mosaic_0001>

<bundles_post_ra>
// kernel: tpu_custom_call.1
= control target key start
LH: loop header
LB: loop body
LE: loop exit
PB: predicated region body
PF: predicated region fallthrough
CT: control target
= control target key end

     0   :  { %16 = vsyncpa [#allocation3], 0  ;;  %s2585_s0 = inlined_call_operand.vmem [shape: f32[16,256], index: 0, kind: input, shape index: {}]   ;;  %s2586_s1 = inlined_call_operand.vmem [shape: f32[3,256], index: 1, kind: input, shape index: {}]   ;;  %s2587_s2 = inlined_call_operand.vmem [shape: f32[2,32,48], index: 2, kind: input, shape index: {}]   ;;  %s2588_s3 = inlined_call_operand.vmem [shape: f32[2,32,1], index: 3, kind: input, shape index: {}]   ;;  %s2589_s4 = inlined_call_operand.vmem [shape: f32[2,32,96], index: 4, kind: input, shape index: {}]   ;;  %s2590_s5 = inlined_call_operand.vmem [shape: f32[2,32,1], index: 5, kind: input, shape index: {}]   ;;  %s2591_s6 = inlined_call_operand.vmem [shape: f32[2,32,96], index: 6, kind: input, shape index: {}]   ;;  %s2592_s7 = inlined_call_operand.vmem [shape: f32[2,32,1], index: 7, kind: input, shape index: {}]   ;;  %s2593_s8 = inlined_call_operand.vmem [shape: f32[2,32,96], index: 8, kind: input, shape index: {}]   ;;  %s2594_s9 = inlined_call_operand.vmem [shape: f32[2,32,1], index: 9, kind: input, shape index: {}]   ;;  %s2595_s10 = inlined_call_operand.vmem [shape: f32[2,32,1], index: 10, kind: input, shape index: {}]   ;;  %s2596_s11 = inlined_call_operand.hbm [shape: f32[2,32,256], index: 11, kind: output, shape index: {}]  }
   0x1   :  { %18 = vsyncpa [#allocation3 + $0x1], 0  ;;  %s1935_s17 = smov 0   ;;  %s1937_s18 = smov 0  }
   0x2   :  { %s1939_s19 = smov 0   ;;  %s1941_s20 = smov 0  }
   0x3 LB: > { %s1956_s21 = sadd.s32 4294967295, %s1866_s20   ;;  %s1619_s22 = sadd.s32 4294967294, %s1866_s20   ;;  %s1866_s20 = sphi %s1941_s20, %s2602_s20   ;;  %s1862_s19 = sphi %s1939_s19, %s2601_s19   ;;  %s1858_s18 = sphi %s1937_s18, %s2600_s18   ;;  %s1854_s17 = sphi %s1935_s17, %s2599_s17  }
   0x4   : > { %s1960_s23 = sadd.s32 1, %s1866_s20   ;;  %s307_s24 = sadd.s32 1, %s1862_s19 }
   0x5   : > { %s304_s25 = ssub.s32 %s1866_s20, %s1960_s23  ;;  %p317_p0 = scmp.ne.s32.totalorder %s1862_s19, %s1858_s18 }
   0x6   : > { %p305_p1 = scmp.eq.s32.totalorder %s304_s25, 0  ;;  %p318_p2 = scmp.eq.s32.totalorder %s1956_s21, 1 }
   0x7   : > { %p323_p3 = scmp.ne.s32.totalorder %s1858_s18, %s1854_s17  ;;  %p324_p4 = scmp.eq.s32.totalorder %s1619_s22, 1 }
   0x8   : > { %s1971_s26 = scalar_select %p305_p1, %s1862_s19, %s307_s24  }
   0x9   : > { %p1973_p5 = por %p318_p2, %p317_p0  ;;  %p1977_p6 = por %p324_p4, %p323_p3 }
   0xa   : > { %p1622_p7 = scmp.ge.s32.totalorder %s1866_s20, 1  ;;  %p420_p8 = scmp.lt.s32.totalorder %s1866_s20, 3 }
   0xc   : > { %p421_p9 = pnand %p1622_p7, %p420_p8 }
   0xd   : > { %v1986_v0 = vld [vmem:[%s2585_s0 + $0x8] sm:$0xff] (!%p421_p9)  ;;  %v1991_v1 = vld [vmem:[%s2585_s0] sm:$0xff] (!%p421_p9)  ;;  %v1996_v2 = vld [vmem:[%s2585_s0 + $0x18] sm:$0xff] (!%p421_p9)  ;;  %v558_v3 = vlaneseq (!%p421_p9)  ;;  %s1868_s16 = smov (!%p421_p9), 1   ;;  %v1869_v13 = vmov (!%p421_p9), 0.0   ;;  %s1870_s30 = smov (!%p421_p9), 127  }
   0xe   : > { %424 = sbr.rel (%p421_p9) target bundleno = 1518 (0x5ee), region = 64  ;;  %554 = vrot.lane.b32.xlu1 (!%p421_p9), %v1986_v0, %s1868_s16  ;;  %550 = vrot.lane.b32.xlu0 (!%p421_p9), %v1991_v1, %s1868_s16  ;;  %v2005_v4 = vld [vmem:[%s2585_s0 + $0x10] sm:$0xff] (!%p421_p9)  ;;  %v1677_v5 = vpack.c.bf16 (!%p421_p9), %v1996_v2, %v1986_v0  ;;  %v545_v10 = vld [vmem:[%s2586_s1] sm:$0x77] (!%p421_p9)  ;;  %p500_p10 = scmp.lt.s32.totalorder (!%p421_p9), %s1956_s21, 1  ;;  %v1871_v16 = vmov (!%p421_p9), 0  }
   0xf   : > { %v567_v6 = vshrl.u32 (!%p421_p9), %v558_v3, 7  ;;  %v1679_v7 = vpack.c.bf16 (!%p421_p9), %v2005_v4, %v1991_v1  ;;  %728 = vmatprep.mubr.f32.mxu0 (!%p421_p9), %v1869_v13  ;;  %956 = vmatprep.mubr.f32.mxu1 (!%p421_p9), %v1869_v13  ;;  %v2040_v23 = vand.u32 (!%p421_p9), 127, %v558_v3  ;;  %vm651_vm2 = vcmask (!%p421_p9), 392192  }
  0x10   : > { %1803 = vset.pattern.permute.xlu1 (!%p421_p9), %v1871_v16  ;;  %1802 = vset.pattern.permute.xlu0 (!%p421_p9), %v1871_v16  ;;  %vm879_vm3 = vcmask (!%p421_p9), 785408  }
  0x11   : > { %v763_v8 = vsub.s32 (!%p421_p9), 2, %v567_v6  ;;  %v767_v9 = vsub.s32 (!%p421_p9), 6, %v567_v6  ;;  %v568_v21 = vsub.s32 (!%p421_p9), 0, %v567_v6  ;;  %v572_v22 = vsub.s32 (!%p421_p9), 4, %v567_v6 }
  0x12   : > { %556 = vrot.lane.b32.xlu1 (!%p421_p9), %v1996_v2, %s1868_s16  ;;  %552 = vrot.lane.b32.xlu0 (!%p421_p9), %v2005_v4, %s1868_s16  ;;  %vm560_vm0 = vcmp.lt.s32.totalorder (!%p421_p9), %v2040_v23, 1  ;;  %v603_v28 = vsub.s32 (!%p421_p9), 1, %v567_v6  ;;  %v607_v29 = vsub.s32 (!%p421_p9), 5, %v567_v6  ;;  %vm596_vm1 = vcmp.lt.s32.totalorder (!%p421_p9), %v2040_v23, 127 }
  0x13   : > { %v764_v11 = vrot.slane (!%p421_p9), %v545_v10, %v763_v8  ;;  %v768_v12 = vrot.slane (!%p421_p9), %v545_v10, %v767_v9  ;;  %v569_v24 = vrot.slane (!%p421_p9), %v545_v10, %v568_v21  ;;  %v573_v25 = vrot.slane (!%p421_p9), %v545_v10, %v572_v22 }
  0x14   : > { %v604_v38 = vrot.slane (!%p421_p9), %v545_v10, %v603_v28  ;;  %v608_v39 = vrot.slane (!%p421_p9), %v545_v10, %v607_v29 }
  0x15   : > { %v2019_v14 = vrot.slane %v764_v11, %v763_v8  ;;  %v2026_v15 = vrot.slane %v768_v12, %v763_v8  ;;  %s501_s12 = scalar_select %p500_p10, %s1956_s21, 1  ;;  %v2043_v30 = vrot.slane %v569_v24, %v568_v21  ;;  %v2045_v31 = vrot.slane %v573_v25, %v568_v21 }
  0x16   : > { %590 = vrot.lane.b32.xlu1 %v2005_v4, %s1870_s30  ;;  %588 = vrot.lane.b32.xlu0 %v1991_v1, %s1870_s30  ;;  %v2060_v48 = vrot.slane %v604_v38, %v603_v28  ;;  %v2062_v49 = vrot.slane %v608_v39, %v603_v28 }
  0x17   : > { %s2034_s13 = sshll.u32 %s501_s12, 5 }
  0x18   : > { %s509_s22 = scalar_lea.vmem %s2588_s3, %s2034_s13  ;;  %s504_s29 = scalar_lea.vmem %s2587_s2, %s2034_s13 }
  0x19   : > { %v628_v17 = vld [vmem:[%s509_s22 + $0x8] sm:$0xff]  ;;  %v627_v18 = vld [vmem:[%s509_s22] sm:$0xff]  ;;  %v629_v19 = vld [vmem:[%s509_s22 + $0x10] sm:$0xff]  ;;  %s519_s15 = scalar_lea.vmem %s2590_s5, %s2034_s13  ;;  %s514_s25 = scalar_lea.vmem %s2589_s4, %s2034_s13 }
  0x1a   : > { %594 = vrot.lane.b32.xlu1 %v1996_v2, %s1870_s30  ;;  %592 = vrot.lane.b32.xlu0 %v1986_v0, %s1870_s30  ;;  %v630_v20 = vld [vmem:[%s509_s22 + $0x18] sm:$0xff]  ;;  %v623_v62 = vld [vmem:[%s504_s29] sm:$0xff]  ;;  %s529_s14 = scalar_lea.vmem %s2592_s7, %s2034_s13  ;;  %s524_s24 = scalar_lea.vmem %s2591_s6, %s2034_s13 }
  0x1b   : > { %v624_v63 = vld [vmem:[%s504_s29 + $0x8] sm:$0xff]  ;;  %v625_v0 = vld [vmem:[%s504_s29 + $0x10] sm:$0xff]  ;;  %v626_v1 = vld [vmem:[%s504_s29 + $0x18] sm:$0xff]  ;;  %s539_s12 = scalar_lea.vmem %s2594_s9, %s2034_s13 }
  0x1e   : > { %638 = vperm.xlu1 %1803, %v628_v17   ;;  %633 = vperm.xlu0 %1802, %v627_v18  }
  0x22   : > { %643 = vperm.xlu1 %1803, %v629_v19   ;;  %648 = vperm.xlu0 %1802, %v630_v20  }
  0x80   : > { %v555_v26 = vpop.permute.xlu1 %554  ;;  %v551_v27 = vpop.permute.xlu0 %550 }
  0x81   : > { %v561_v32 = vsel %vm560_vm0, %v551_v27, %v555_v26  ;;  %v563_v33 = vsel %vm560_vm0, %v555_v26, %v551_v27 }
  0x82   : > { %v584_v40 = vmul.f32 %v2043_v30, %v563_v33  ;;  %v585_v42 = vmul.f32 %v2045_v31, %v561_v32 }
  0x84   : > { %v557_v34 = vpop.permute.xlu1 %556  ;;  %v553_v35 = vpop.permute.xlu0 %552 }
  0x85   : > { %v562_v36 = vsel %vm560_vm0, %v553_v35, %v557_v34  ;;  %v564_v37 = vsel %vm560_vm0, %v557_v34, %v553_v35 }
  0x86   : > { %v586_v41 = vmul.f32 %v2043_v30, %v564_v37  ;;  %v587_v43 = vmul.f32 %v2045_v31, %v562_v36 }
  0x88   : > { %v591_v44 = vpop.permute.xlu1 %590  ;;  %v589_v45 = vpop.permute.xlu0 %588  ;;  %v1673_v46 = vpack.c.bf16 %v587_v43, %v585_v42  ;;  %v1675_v47 = vpack.c.bf16 %v586_v41, %v584_v40 }
  0x8a   : > { %1674 = vmatprep.subr.bf16.mxu0 %v1673_v46 }
  0x8b   : > { %1676 = vmatpush1.bf16.msra.mxu0 %v1675_v47 }
  0x8c   : > { %v595_v50 = vpop.permute.xlu1 %594  ;;  %v593_v51 = vpop.permute.xlu0 %592  ;;  %1678 = vmatprep.subr.bf16.mxu0 %v1677_v5 }
  0x8d   : > { %v598_v52 = vsel %vm596_vm1, %v591_v44, %v595_v50  ;;  %v600_v53 = vsel %vm596_vm1, %v595_v50, %v591_v44  ;;  %v597_v54 = vsel %vm596_vm1, %v589_v45, %v593_v51  ;;  %v599_v55 = vsel %vm596_vm1, %v593_v51, %v589_v45  ;;  %v855_v50 = vld [vmem:[%s519_s15] sm:$0xff]  ;;  %v856_v51 = vld [vmem:[%s519_s15 + $0x8] sm:$0xff] }
  0x8e   : > { %v621_v56 = vmul.f32 %v2060_v48, %v598_v52  ;;  %v622_v57 = vmul.f32 %v2062_v49, %v600_v53  ;;  %v619_v58 = vmul.f32 %v2060_v48, %v597_v54  ;;  %v620_v59 = vmul.f32 %v2062_v49, %v599_v55  ;;  %v857_v52 = vld [vmem:[%s519_s15 + $0x10] sm:$0xff]  ;;  %v858_v53 = vld [vmem:[%s519_s15 + $0x18] sm:$0xff]  ;;  %s544_s15 = scalar_lea.vmem %s2595_s10, %s2034_s13 }
  0x8f   : > { %1680 = vmatpush1.bf16.msra.mxu0 %v1679_v7 }
  0x90   : > { %v1681_v60 = vpack.c.bf16 %v622_v57, %v620_v59  ;;  %v1683_v61 = vpack.c.bf16 %v621_v56, %v619_v58 }
  0x92   : > { %1682 = vmatprep.subr.bf16.mxu0 %v1681_v60 }
  0x93   : > { %1684 = vmatpush1.bf16.msra.mxu0 %v1683_v61 }
  0x96   : > { %1642 = vmatmul.mubr.msk.f32.vlgmr.msra.gmra.mrb[0].mxu0 %vm651_vm2, %v623_v62 }
  0x97   : > { %734 = vmatprep.mubr.f32.mxu0 %v1869_v13 }
  0x9a   : > { %1643 = vmatmul.mubr.msk.f32.gmra.mrb[2].mxu0 %vm651_vm2, %v624_v63 }
  0x9b   : > { %740 = vmatprep.mubr.f32.mxu0 %v1869_v13 }
  0x9d   : > { %v634_v2 = vpop.permute.xlu0 %633  ;;  %v639_v6 = vpop.permute.xlu1 %638 }
  0x9e   : > { %1644 = vmatmul.mubr.msk.f32.gmra.mrb[4].mxu0 %vm651_vm2, %v625_v0 }
  0x9f   : > { %746 = vmatprep.mubr.f32.mxu0 %v1869_v13 }
  0xa1   : > { %v644_v19 = vpop.permute.xlu1 %643  ;;  %v649_v33 = vpop.permute.xlu0 %648 }
  0xa2   : > { %1645 = vmatmul.mubr.msk.f32.gmra.mrb[6].mxu0 %vm651_vm2, %v626_v1 }
  0xa3   : > { %1165 = vmatprep.mubr.f32.mxu0 %v1869_v13 }
 0x169   : > { %v730_v3 = vpop.f32.mrb[0].mxu0 }
 0x16a   : > { %v731_v4 = vadd.f32 %v730_v3, %v634_v2  ;;  %v732_v5 = vpop.f32.mrb[1].mxu0 }
 0x16b   : > { %v733_v7 = vadd.f32 %v732_v5, %v634_v2 }
 0x16c   : > { %v753_v8 = vmax.f32 %v731_v4, 0.0 }
 0x16d   : > { %v736_v9 = vpop.f32.mrb[2].mxu0  ;;  %v754_v11 = vmax.f32 %v733_v7, 0.0 }
 0x16e   : > { %v2091_v10 = vmul.f32 %v2019_v14, %v753_v8  ;;  %v737_v12 = vadd.f32 %v736_v9, %v639_v6  ;;  %v738_v16 = vpop.f32.mrb[3].mxu0 }
 0x16f   : > { %v739_v17 = vadd.f32 %v738_v16, %v639_v6  ;;  %v2096_v22 = vmul.f32 %v2026_v15, %v754_v11 }
 0x170   : > { %v755_v18 = vmax.f32 %v737_v12, 0.0  ;;  %787 = vrot.lane.b32.xlu1 %v2091_v10, %s1868_s16 }
 0x171   : > { %v756_v20 = vmax.f32 %v739_v17, 0.0  ;;  %v742_v21 = vpop.f32.mrb[4].mxu0 }
 0x172   : > { %v2099_v24 = vmul.f32 %v2019_v14, %v755_v18  ;;  %v743_v25 = vadd.f32 %v742_v21, %v644_v19  ;;  %v744_v26 = vpop.f32.mrb[5].mxu0 }
 0x173   : > { %v2102_v27 = vmul.f32 %v2026_v15, %v756_v20  ;;  %v745_v28 = vadd.f32 %v744_v26, %v644_v19 }
 0x174   : > { %v757_v29 = vmax.f32 %v743_v25, 0.0  ;;  %789 = vrot.lane.b32.xlu0 %v2099_v24, %s1868_s16  ;;  %795 = vrot.lane.b32.xlu1 %v2096_v22, %s1868_s16  ;;  %v1695_v32 = vpack.c.bf16 %v2099_v24, %v2091_v10 }
 0x175   : > { %v748_v34 = vpop.f32.mrb[6].mxu0  ;;  %v1693_v35 = vpack.c.bf16 %v2102_v27, %v2096_v22  ;;  %v758_v37 = vmax.f32 %v745_v28, 0.0 }
 0x176   : > { %v2113_v36 = vmul.f32 %v2019_v14, %v757_v29  ;;  %v749_v38 = vadd.f32 %v748_v34, %v649_v33  ;;  %v750_v39 = vpop.f32.mrb[7].mxu0 }
 0x177   : > { %v751_v40 = vadd.f32 %v750_v39, %v649_v33  ;;  %v2120_v43 = vmul.f32 %v2026_v15, %v758_v37 }
 0x178   : > { %v759_v41 = vmax.f32 %v749_v38, 0.0  ;;  %797 = vrot.lane.b32.xlu0 %v2102_v27, %s1868_s16  ;;  %791 = vrot.lane.b32.xlu1 %v2113_v36, %s1868_s16 }
 0x179   : > { %v760_v42 = vmax.f32 %v751_v40, 0.0 }
 0x17a   : > { %v2123_v44 = vmul.f32 %v2019_v14, %v759_v41 }
 0x17b   : > { %v2126_v45 = vmul.f32 %v2026_v15, %v760_v42 }
 0x17c   : > { %793 = vrot.lane.b32.xlu0 %v2123_v44, %s1868_s16  ;;  %799 = vrot.lane.b32.xlu1 %v2120_v43, %s1868_s16  ;;  %v1699_v46 = vpack.c.bf16 %v2123_v44, %v2113_v36 }
 0x17d   : > { %v1697_v47 = vpack.c.bf16 %v2126_v45, %v2120_v43 }
 0x180   : > { %801 = vrot.lane.b32.xlu0 %v2126_v45, %s1868_s16  ;;  %819 = vrot.lane.b32.xlu1 %v2091_v10, %s1870_s30 }
 0x184   : > { %821 = vrot.lane.b32.xlu0 %v2099_v24, %s1870_s30  ;;  %827 = vrot.lane.b32.xlu1 %v2096_v22, %s1870_s30 }
 0x188   : > { %829 = vrot.lane.b32.xlu0 %v2102_v27, %s1870_s30  ;;  %823 = vrot.lane.b32.xlu1 %v2113_v36, %s1870_s30 }
 0x18c   : > { %825 = vrot.lane.b32.xlu0 %v2123_v44, %s1870_s30  ;;  %831 = vrot.lane.b32.xlu1 %v2120_v43, %s1870_s30 }
 0x190   : > { %833 = vrot.lane.b32.xlu0 %v2126_v45, %s1870_s30  ;;  %861 = vperm.xlu1 %1803, %v855_v50  }
 0x194   : > { %866 = vperm.xlu0 %1802, %v856_v51   ;;  %871 = vperm.xlu1 %1803, %v857_v52  }
 0x198   : > { %876 = vperm.xlu0 %1802, %v858_v53  }
 0x1e2   : > { %v788_v54 = vpop.permute.xlu1 %787 }
 0x1e6   : > { %v790_v55 = vpop.permute.xlu0 %789  ;;  %v796_v56 = vpop.permute.xlu1 %795 }
 0x1e7   : > { %v803_v57 = vsel %vm560_vm0, %v788_v54, %v796_v56  ;;  %v807_v58 = vsel %vm560_vm0, %v796_v56, %v788_v54  ;;  %v853_v56 = vld [vmem:[%s514_s25 + $0x10] sm:$0xff] }
 0x1e8   : > { %v811_v63 = vmul.f32 %v807_v58, %v2043_v30  ;;  %v812_v1 = vmul.f32 %v803_v57, %v2045_v31  ;;  %v854_v57 = vld [vmem:[%s514_s25 + $0x18] sm:$0xff] }
 0x1ea   : > { %v798_v59 = vpop.permute.xlu0 %797  ;;  %v792_v60 = vpop.permute.xlu1 %791 }
 0x1eb   : > { %v804_v61 = vsel %vm560_vm0, %v790_v55, %v798_v59  ;;  %v808_v62 = vsel %vm560_vm0, %v798_v59, %v790_v55  ;;  %v852_v55 = vld [vmem:[%s514_s25 + $0x8] sm:$0xff] }
 0x1ec   : > { %v813_v0 = vmul.f32 %v808_v62, %v2043_v30  ;;  %v814_v2 = vmul.f32 %v804_v61, %v2045_v31 }
 0x1ee   : > { %v794_v3 = vpop.permute.xlu0 %793  ;;  %v800_v4 = vpop.permute.xlu1 %799  ;;  %v1685_v5 = vpack.c.bf16 %v814_v2, %v812_v1  ;;  %v1687_v6 = vpack.c.bf16 %v813_v0, %v811_v63 }
 0x1ef   : > { %v805_v7 = vsel %vm560_vm0, %v792_v60, %v800_v4  ;;  %v809_v8 = vsel %vm560_vm0, %v800_v4, %v792_v60 }
 0x1f0   : > { %1686 = vmatprep.subr.bf16.mxu1 %v1685_v5  ;;  %v815_v17 = vmul.f32 %v809_v8, %v2043_v30  ;;  %v816_v18 = vmul.f32 %v805_v7, %v2045_v31 }
 0x1f1   : > { %1688 = vmatpush1.bf16.msra.mxu1 %v1687_v6 }
 0x1f2   : > { %v802_v9 = vpop.permute.xlu0 %801  ;;  %v820_v11 = vpop.permute.xlu1 %819 }
 0x1f3   : > { %v806_v12 = vsel %vm560_vm0, %v794_v3, %v802_v9  ;;  %v810_v16 = vsel %vm560_vm0, %v802_v9, %v794_v3 }
 0x1f4   : > { %v817_v19 = vmul.f32 %v810_v16, %v2043_v30  ;;  %v818_v20 = vmul.f32 %v806_v12, %v2045_v31 }
 0x1f6   : > { %v822_v21 = vpop.permute.xlu0 %821  ;;  %v828_v25 = vpop.permute.xlu1 %827  ;;  %v1689_v26 = vpack.c.bf16 %v818_v20, %v816_v18  ;;  %v1691_v28 = vpack.c.bf16 %v817_v19, %v815_v17 }
 0x1f7   : > { %v839_v34 = vsel %vm596_vm1, %v828_v25, %v820_v11  ;;  %v835_v22 = vsel %vm596_vm1, %v820_v11, %v828_v25 }
 0x1f8   : > { %1690 = vmatprep.subr.bf16.mxu1 %v1689_v26  ;;  %v844_v27 = vmul.f32 %v839_v34, %v2062_v49  ;;  %v843_v50 = vmul.f32 %v835_v22, %v2060_v48 }
 0x1f9   : > { %1692 = vmatpush1.bf16.msra.mxu1 %v1691_v28 }
 0x1fa   : > { %v830_v29 = vpop.permute.xlu0 %829  ;;  %1694 = vmatprep.subr.bf16.mxu1 %v1693_v35  ;;  %v824_v33 = vpop.permute.xlu1 %823 }
 0x1fb   : > { %v840_v37 = vsel %vm596_vm1, %v830_v29, %v822_v21  ;;  %v836_v38 = vsel %vm596_vm1, %v822_v21, %v830_v29 }
 0x1fc   : > { %v846_v39 = vmul.f32 %v840_v37, %v2062_v49  ;;  %v845_v41 = vmul.f32 %v836_v38, %v2060_v48 }
 0x1fd   : > { %1696 = vmatpush1.bf16.msra.mxu1 %v1695_v32 }
 0x1fe   : > { %v826_v35 = vpop.permute.xlu0 %825  ;;  %v832_v40 = vpop.permute.xlu1 %831  ;;  %1698 = vmatprep.subr.bf16.mxu1 %v1697_v47  ;;  %v1701_v42 = vpack.c.bf16 %v846_v39, %v844_v27  ;;  %v1703_v47 = vpack.c.bf16 %v845_v41, %v843_v50 }
 0x1ff   : > { %v837_v10 = vsel %vm596_vm1, %v824_v33, %v832_v40  ;;  %v841_v24 = vsel %vm596_vm1, %v832_v40, %v824_v33 }
 0x200   : > { %v847_v51 = vmul.f32 %v837_v10, %v2060_v48  ;;  %v848_v52 = vmul.f32 %v841_v24, %v2062_v49  ;;  %v1065_v10 = vld [vmem:[%s529_s14] sm:$0xff]  ;;  %v1066_v24 = vld [vmem:[%s529_s14 + $0x8] sm:$0xff] }
 0x201   : > { %1700 = vmatpush1.bf16.msra.mxu1 %v1699_v46  ;;  %v851_v46 = vld [vmem:[%s514_s25] sm:$0xff] }
 0x202   : > { %v834_v32 = vpop.permute.xlu0 %833  ;;  %1702 = vmatprep.subr.bf16.mxu1 %v1701_v42 }
 0x203   : > { %v838_v43 = vsel %vm596_vm1, %v826_v35, %v834_v32  ;;  %v842_v45 = vsel %vm596_vm1, %v834_v32, %v826_v35  ;;  %v1067_v32 = vld [vmem:[%s529_s14 + $0x10] sm:$0xff] }
 0x204   : > { %v849_v53 = vmul.f32 %v838_v43, %v2060_v48  ;;  %v850_v54 = vmul.f32 %v842_v45, %v2062_v49  ;;  %v1068_v43 = vld [vmem:[%s529_s14 + $0x18] sm:$0xff] }
 0x205   : > { %1704 = vmatpush1.bf16.msra.mxu1 %v1703_v47 }
 0x206   : > { %v1705_v36 = vpack.c.bf16 %v850_v54, %v848_v52  ;;  %v1707_v44 = vpack.c.bf16 %v849_v53, %v847_v51 }
 0x208   : > { %1706 = vmatprep.subr.bf16.mxu1 %v1705_v36 }
 0x209   : > { %1708 = vmatpush1.bf16.msra.mxu1 %v1707_v44 }
 0x20c   : > { %1646 = vmatmul.mubr.msk.f32.vlgmr.msra.gmra.mrb[0].mxu1 %vm879_vm3, %v851_v46 }
 0x20d   : > { %962 = vmatprep.mubr.f32.mxu1 %v1869_v13 }
 0x20f   : > { %v862_v58 = vpop.permute.xlu1 %861 }
 0x210   : > { %1647 = vmatmul.mubr.msk.f32.gmra.mrb[2].mxu1 %vm879_vm3, %v852_v55 }
 0x211   : > { %968 = vmatprep.mubr.f32.mxu1 %v1869_v13 }
 0x213   : > { %v867_v0 = vpop.permute.xlu0 %866  ;;  %v872_v8 = vpop.permute.xlu1 %871 }
 0x214   : > { %1648 = vmatmul.mubr.msk.f32.gmra.mrb[4].mxu1 %vm879_vm3, %v853_v56 }
 0x215   : > { %974 = vmatprep.mubr.f32.mxu1 %v1869_v13 }
 0x217   : > { %v877_v26 = vpop.permute.xlu0 %876 }
 0x218   : > { %1649 = vmatmul.mubr.msk.f32.gmra.mrb[6].mxu1 %vm879_vm3, %v854_v57 }
 0x219   : > { %1374 = vmatprep.mubr.f32.mxu1 %v1869_v13 }
 0x2df   : > { %v958_v59 = vpop.f32.mrb[0].mxu1 }
 0x2e0   : > { %v959_v60 = vadd.f32 %v958_v59, %v862_v58  ;;  %v960_v61 = vpop.f32.mrb[1].mxu1 }
 0x2e1   : > { %v961_v62 = vadd.f32 %v960_v61, %v862_v58 }
 0x2e2   : > { %v981_v63 = vmax.f32 %v959_v60, 0.0 }
 0x2e3   : > { %v964_v1 = vpop.f32.mrb[2].mxu1  ;;  %v982_v3 = vmax.f32 %v961_v62, 0.0 }
 0x2e4   : > { %v2231_v2 = vmul.f32 %v981_v63, %v2019_v14  ;;  %v965_v4 = vadd.f32 %v964_v1, %v867_v0  ;;  %v966_v5 = vpop.f32.mrb[3].mxu1 }
 0x2e5   : > { %v967_v6 = vadd.f32 %v966_v5, %v867_v0  ;;  %v2236_v12 = vmul.f32 %v982_v3, %v2026_v15 }
 0x2e6   : > { %v983_v7 = vmax.f32 %v965_v4, 0.0  ;;  %997 = vrot.lane.b32.xlu1 %v2231_v2, %s1868_s16 }
 0x2e7   : > { %v984_v9 = vmax.f32 %v967_v6, 0.0  ;;  %v970_v11 = vpop.f32.mrb[4].mxu1 }
 0x2e8   : > { %v2239_v16 = vmul.f32 %v983_v7, %v2019_v14  ;;  %v971_v17 = vadd.f32 %v970_v11, %v872_v8  ;;  %v972_v18 = vpop.f32.mrb[5].mxu1 }
 0x2e9   : > { %v2242_v19 = vmul.f32 %v984_v9, %v2026_v15  ;;  %v973_v20 = vadd.f32 %v972_v18, %v872_v8 }
 0x2ea   : > { %v985_v21 = vmax.f32 %v971_v17, 0.0  ;;  %999 = vrot.lane.b32.xlu0 %v2239_v16, %s1868_s16  ;;  %1005 = vrot.lane.b32.xlu1 %v2236_v12, %s1868_s16  ;;  %v1719_v25 = vpack.c.bf16 %v2239_v16, %v2231_v2 }
 0x2eb   : > { %v976_v28 = vpop.f32.mrb[6].mxu1  ;;  %v1717_v29 = vpack.c.bf16 %v2242_v19, %v2236_v12  ;;  %v986_v34 = vmax.f32 %v973_v20, 0.0 }
 0x2ec   : > { %v2253_v33 = vmul.f32 %v985_v21, %v2019_v14  ;;  %v977_v37 = vadd.f32 %v976_v28, %v877_v26  ;;  %v978_v38 = vpop.f32.mrb[7].mxu1 }
 0x2ed   : > { %v979_v39 = vadd.f32 %v978_v38, %v877_v26  ;;  %v2260_v35 = vmul.f32 %v986_v34, %v2026_v15 }
 0x2ee   : > { %v987_v22 = vmax.f32 %v977_v37, 0.0  ;;  %1007 = vrot.lane.b32.xlu0 %v2242_v19, %s1868_s16  ;;  %1001 = vrot.lane.b32.xlu1 %v2253_v33, %s1868_s16 }
 0x2ef   : > { %v988_v27 = vmax.f32 %v979_v39, 0.0 }
 0x2f0   : > { %v2263_v40 = vmul.f32 %v987_v22, %v2019_v14 }
 0x2f1   : > { %v2266_v41 = vmul.f32 %v988_v27, %v2026_v15 }
 0x2f2   : > { %1003 = vrot.lane.b32.xlu0 %v2263_v40, %s1868_s16  ;;  %1009 = vrot.lane.b32.xlu1 %v2260_v35, %s1868_s16  ;;  %v1723_v42 = vpack.c.bf16 %v2263_v40, %v2253_v33 }
 0x2f3   : > { %v1721_v50 = vpack.c.bf16 %v2266_v41, %v2260_v35 }
 0x2f6   : > { %1011 = vrot.lane.b32.xlu0 %v2266_v41, %s1868_s16  ;;  %1029 = vrot.lane.b32.xlu1 %v2231_v2, %s1870_s30 }
 0x2fa   : > { %1031 = vrot.lane.b32.xlu0 %v2239_v16, %s1870_s30  ;;  %1037 = vrot.lane.b32.xlu1 %v2236_v12, %s1870_s30 }
 0x2fe   : > { %1039 = vrot.lane.b32.xlu0 %v2242_v19, %s1870_s30  ;;  %1033 = vrot.lane.b32.xlu1 %v2253_v33, %s1870_s30 }
 0x302   : > { %1035 = vrot.lane.b32.xlu0 %v2263_v40, %s1870_s30  ;;  %1041 = vrot.lane.b32.xlu1 %v2260_v35, %s1870_s30 }
 0x306   : > { %1043 = vrot.lane.b32.xlu0 %v2266_v41, %s1870_s30  ;;  %1071 = vperm.xlu1 %1803, %v1065_v10  }
 0x30a   : > { %1076 = vperm.xlu0 %1802, %v1066_v24   ;;  %1081 = vperm.xlu1 %1803, %v1067_v32  }
 0x30e   : > { %1086 = vperm.xlu0 %1802, %v1068_v43  }
 0x358   : > { %v998_v45 = vpop.permute.xlu1 %997 }
 0x35c   : > { %v1000_v47 = vpop.permute.xlu0 %999  ;;  %v1006_v51 = vpop.permute.xlu1 %1005 }
 0x35d   : > { %v1013_v52 = vsel %vm560_vm0, %v998_v45, %v1006_v51  ;;  %v1017_v53 = vsel %vm560_vm0, %v1006_v51, %v998_v45  ;;  %v1063_v51 = vld [vmem:[%s524_s24 + $0x10] sm:$0xff] }
 0x35e   : > { %v1021_v55 = vmul.f32 %v1017_v53, %v2043_v30  ;;  %v1022_v56 = vmul.f32 %v1013_v52, %v2045_v31  ;;  %v1064_v52 = vld [vmem:[%s524_s24 + $0x18] sm:$0xff] }
 0x360   : > { %v1008_v54 = vpop.permute.xlu0 %1007  ;;  %v1002_v36 = vpop.permute.xlu1 %1001 }
 0x361   : > { %v1014_v44 = vsel %vm560_vm0, %v1000_v47, %v1008_v54  ;;  %v1018_v46 = vsel %vm560_vm0, %v1008_v54, %v1000_v47  ;;  %v1062_v47 = vld [vmem:[%s524_s24 + $0x8] sm:$0xff] }
 0x362   : > { %v1023_v57 = vmul.f32 %v1018_v46, %v2043_v30  ;;  %v1024_v58 = vmul.f32 %v1014_v44, %v2045_v31 }
 0x364   : > { %v1711_v59 = vpack.c.bf16 %v1023_v57, %v1021_v55  ;;  %v1004_v60 = vpop.permute.xlu0 %1003  ;;  %v1010_v61 = vpop.permute.xlu1 %1009  ;;  %v1709_v62 = vpack.c.bf16 %v1024_v58, %v1022_v56 }
 0x365   : > { %v1015_v63 = vsel %vm560_vm0, %v1002_v36, %v1010_v61  ;;  %v1019_v0 = vsel %vm560_vm0, %v1010_v61, %v1002_v36 }
 0x366   : > { %1710 = vmatprep.subr.bf16.mxu0 %v1709_v62  ;;  %v1025_v6 = vmul.f32 %v1019_v0, %v2043_v30  ;;  %v1026_v7 = vmul.f32 %v1015_v63, %v2045_v31 }
 0x367   : > { %1712 = vmatpush1.bf16.msra.mxu0 %v1711_v59 }
 0x368   : > { %v1012_v1 = vpop.permute.xlu0 %1011  ;;  %v1030_v3 = vpop.permute.xlu1 %1029 }
 0x369   : > { %v1016_v4 = vsel %vm560_vm0, %v1004_v60, %v1012_v1  ;;  %v1020_v5 = vsel %vm560_vm0, %v1012_v1, %v1004_v60 }
 0x36a   : > { %v1027_v8 = vmul.f32 %v1020_v5, %v2043_v30  ;;  %v1028_v9 = vmul.f32 %v1016_v4, %v2045_v31 }
 0x36c   : > { %v1715_v11 = vpack.c.bf16 %v1027_v8, %v1025_v6  ;;  %v1032_v17 = vpop.permute.xlu0 %1031  ;;  %v1038_v18 = vpop.permute.xlu1 %1037  ;;  %v1713_v20 = vpack.c.bf16 %v1028_v9, %v1026_v7 }
 0x36d   : > { %v1049_v28 = vsel %vm596_vm1, %v1038_v18, %v1030_v3  ;;  %v1045_v12 = vsel %vm596_vm1, %v1030_v3, %v1038_v18 }
 0x36e   : > { %1714 = vmatprep.subr.bf16.mxu0 %v1713_v20  ;;  %v1054_v19 = vmul.f32 %v1049_v28, %v2062_v49  ;;  %v1053_v10 = vmul.f32 %v1045_v12, %v2060_v48 }
 0x36f   : > { %1716 = vmatpush1.bf16.msra.mxu0 %v1715_v11 }
 0x370   : > { %v1040_v21 = vpop.permute.xlu0 %1039  ;;  %1718 = vmatprep.subr.bf16.mxu0 %v1717_v29  ;;  %v1034_v26 = vpop.permute.xlu1 %1033 }
 0x371   : > { %v1050_v34 = vsel %vm596_vm1, %v1040_v21, %v1032_v17  ;;  %v1046_v37 = vsel %vm596_vm1, %v1032_v17, %v1040_v21 }
 0x372   : > { %v1056_v38 = vmul.f32 %v1050_v34, %v2062_v49  ;;  %v1055_v22 = vmul.f32 %v1046_v37, %v2060_v48 }
 0x373   : > { %1720 = vmatpush1.bf16.msra.mxu0 %v1719_v25 }
 0x374   : > { %v1036_v29 = vpop.permute.xlu0 %1035  ;;  %v1042_v39 = vpop.permute.xlu1 %1041  ;;  %1722 = vmatprep.subr.bf16.mxu0 %v1721_v50  ;;  %v1725_v27 = vpack.c.bf16 %v1056_v38, %v1054_v19  ;;  %v1727_v35 = vpack.c.bf16 %v1055_v22, %v1053_v10 }
 0x375   : > { %v1047_v2 = vsel %vm596_vm1, %v1034_v26, %v1042_v39  ;;  %v1051_v16 = vsel %vm596_vm1, %v1042_v39, %v1034_v26 }
 0x376   : > { %v1057_v24 = vmul.f32 %v1047_v2, %v2060_v48  ;;  %v1058_v32 = vmul.f32 %v1051_v16, %v2062_v49  ;;  %v1274_v2 = vld [vmem:[%s539_s12] sm:$0xff]  ;;  %v1275_v16 = vld [vmem:[%s539_s12 + $0x8] sm:$0xff] }
 0x377   : > { %1724 = vmatpush1.bf16.msra.mxu0 %v1723_v42  ;;  %v1061_v42 = vld [vmem:[%s524_s24] sm:$0xff]  ;;  %s534_s24 = scalar_lea.vmem %s2593_s8, %s2034_s13  ;;  %s497_s13 = sand.u32 1, %s1858_s18  }
 0x378   : > { %v1044_v25 = vpop.permute.xlu0 %1043  ;;  %1726 = vmatprep.subr.bf16.mxu0 %v1725_v27  ;;  %v1270_v23 = vld [vmem:[%s534_s24] sm:$0xff]  ;;  %s1623_s25 = sshll.u32 %s497_s13, 6 }
 0x379   : > { %v1048_v41 = vsel %vm596_vm1, %v1036_v29, %v1044_v25  ;;  %v1052_v50 = vsel %vm596_vm1, %v1044_v25, %v1036_v29  ;;  %v1276_v25 = vld [vmem:[%s539_s12 + $0x10] sm:$0xff]  ;;  %s2517_s29 = scalar_lea.vmem [#allocation2], %s1623_s25 }
 0x37a   : > { %v1059_v43 = vmul.f32 %v1048_v41, %v2060_v48  ;;  %v1060_v45 = vmul.f32 %v1052_v50, %v2062_v49  ;;  %v1407_v41 = vld [vmem:[%s544_s15] sm:$0xff]  ;;  %v1408_v50 = vld [vmem:[%s544_s15 + $0x8] sm:$0xff] }
 0x37b   : > { %1728 = vmatpush1.bf16.msra.mxu0 %v1727_v35  ;;  %v1277_v35 = vld [vmem:[%s539_s12 + $0x18] sm:$0xff]  ;;  %s1672_s12 = sshll.u32 %s1956_s21, 10  ;;  %s2544_s21 = scalar_lea.sflag [#allocation3], %s497_s13 }
 0x37c   : > { %v1731_v33 = vpack.c.bf16 %v1059_v43, %v1057_v24  ;;  %v1729_v40 = vpack.c.bf16 %v1060_v45, %v1058_v32  ;;  %v1409_v24 = vld [vmem:[%s544_s15 + $0x10] sm:$0xff]  ;;  %v1410_v32 = vld [vmem:[%s544_s15 + $0x18] sm:$0xff] }
 0x37e   : > { %1730 = vmatprep.subr.bf16.mxu0 %v1729_v40 }
 0x37f   : > { %1732 = vmatpush1.bf16.msra.mxu0 %v1731_v33 }
 0x382   : > { %1650 = vmatmul.mubr.msk.f32.vlgmr.msra.gmra.mrb[8].mxu0 %vm879_vm3, %v1061_v42 }
 0x383   : > { %1171 = vmatprep.mubr.f32.mxu0 %v1869_v13 }
 0x385   : > { %v1072_v53 = vpop.permute.xlu1 %1071 }
 0x386   : > { %1651 = vmatmul.mubr.msk.f32.gmra.mrb[10].mxu0 %vm879_vm3, %v1062_v47 }
 0x387   : > { %1177 = vmatprep.mubr.f32.mxu0 %v1869_v13 }
 0x389   : > { %v1077_v56 = vpop.permute.xlu0 %1076  ;;  %v1082_v0 = vpop.permute.xlu1 %1081 }
 0x38a   : > { %1652 = vmatmul.mubr.msk.f32.gmra.mrb[12].mxu0 %vm879_vm3, %v1063_v51 }
 0x38b   : > { %1183 = vmatprep.mubr.f32.mxu0 %v1869_v13 }
 0x38d   : > { %v1087_v18 = vpop.permute.xlu0 %1086 }
 0x38e   : > { %1653 = vmatmul.mubr.msk.f32.gmra.mrb[14].mxu0 %vm879_vm3, %v1064_v52 }
 0x455   : > { %v1167_v54 = vpop.f32.mrb[8].mxu0 }
 0x456   : > { %v1168_v36 = vadd.f32 %v1167_v54, %v1072_v53  ;;  %v1169_v44 = vpop.f32.mrb[9].mxu0 }
 0x457   : > { %v1170_v46 = vadd.f32 %v1169_v44, %v1072_v53 }
 0x458   : > { %v1190_v55 = vmax.f32 %v1168_v36, 0.0 }
 0x459   : > { %v1173_v57 = vpop.f32.mrb[10].mxu0  ;;  %v1191_v59 = vmax.f32 %v1170_v46, 0.0 }
 0x45a   : > { %v2370_v58 = vmul.f32 %v1190_v55, %v2019_v14  ;;  %v1174_v60 = vadd.f32 %v1173_v57, %v1077_v56  ;;  %v1175_v61 = vpop.f32.mrb[11].mxu0 }
 0x45b   : > { %v1176_v62 = vadd.f32 %v1175_v61, %v1077_v56  ;;  %v2375_v4 = vmul.f32 %v1191_v59, %v2026_v15 }
 0x45c   : > { %v1192_v63 = vmax.f32 %v1174_v60, 0.0  ;;  %1206 = vrot.lane.b32.xlu1 %v2370_v58, %s1868_s16 }
 0x45d   : > { %v1193_v1 = vmax.f32 %v1176_v62, 0.0  ;;  %v1179_v3 = vpop.f32.mrb[12].mxu0 }
 0x45e   : > { %v2378_v5 = vmul.f32 %v1192_v63, %v2019_v14  ;;  %v1180_v6 = vadd.f32 %v1179_v3, %v1082_v0  ;;  %v1181_v7 = vpop.f32.mrb[13].mxu0 }
 0x45f   : > { %v2381_v8 = vmul.f32 %v1193_v1, %v2026_v15  ;;  %v1182_v9 = vadd.f32 %v1181_v7, %v1082_v0 }
 0x460   : > { %v1194_v11 = vmax.f32 %v1180_v6, 0.0  ;;  %1208 = vrot.lane.b32.xlu0 %v2378_v5, %s1868_s16  ;;  %1214 = vrot.lane.b32.xlu1 %v2375_v4, %s1868_s16  ;;  %v1743_v17 = vpack.c.bf16 %v2378_v5, %v2370_v58 }
 0x461   : > { %v1185_v20 = vpop.f32.mrb[14].mxu0  ;;  %v1741_v21 = vpack.c.bf16 %v2381_v8, %v2375_v4  ;;  %v1195_v28 = vmax.f32 %v1182_v9, 0.0 }
 0x462   : > { %v2392_v26 = vmul.f32 %v1194_v11, %v2019_v14  ;;  %v1186_v34 = vadd.f32 %v1185_v20, %v1087_v18  ;;  %v1187_v37 = vpop.f32.mrb[15].mxu0 }
 0x463   : > { %v1188_v38 = vadd.f32 %v1187_v37, %v1087_v18  ;;  %v2399_v29 = vmul.f32 %v1195_v28, %v2026_v15 }
 0x464   : > { %v1196_v12 = vmax.f32 %v1186_v34, 0.0  ;;  %1216 = vrot.lane.b32.xlu0 %v2381_v8, %s1868_s16  ;;  %1210 = vrot.lane.b32.xlu1 %v2392_v26, %s1868_s16 }
 0x465   : > { %v1197_v19 = vmax.f32 %v1188_v38, 0.0 }
 0x466   : > { %v2402_v39 = vmul.f32 %v1196_v12, %v2019_v14 }
 0x467   : > { %v2405_v22 = vmul.f32 %v1197_v19, %v2026_v15 }
 0x468   : > { %1212 = vrot.lane.b32.xlu0 %v2402_v39, %s1868_s16  ;;  %1218 = vrot.lane.b32.xlu1 %v2399_v29, %s1868_s16  ;;  %v1747_v27 = vpack.c.bf16 %v2402_v39, %v2392_v26 }
 0x469   : > { %v1745_v10 = vpack.c.bf16 %v2405_v22, %v2399_v29 }
 0x46c   : > { %1220 = vrot.lane.b32.xlu0 %v2405_v22, %s1868_s16  ;;  %1238 = vrot.lane.b32.xlu1 %v2370_v58, %s1870_s30  ;;  %s1461_s16 = sshll.u32 %s2517_s29, 4  ;;  %s2538_s16 = int_to_ptr.vmem [resolvable:$true] %s1461_s16 }
 0x46d   : > { %s1804_s22 = scalar_lea.vmem %s2538_s16, 1024 }
 0x46e   : > { %p1805_p11 = scmp.ne.s32.totalorder %s2538_s16, %s1804_s22 }
 0x470   : > { %1240 = vrot.lane.b32.xlu0 %v2378_v5, %s1870_s30  ;;  %1246 = vrot.lane.b32.xlu1 %v2375_v4, %s1870_s30  ;;  %p1806_p12 = pnand %p1805_p11, %p1973_p5 }
 0x472   : > { %p1807_p13 = pneg %p1806_p12 }
 0x474   : > { %1248 = vrot.lane.b32.xlu0 %v2381_v8, %s1870_s30  ;;  %1242 = vrot.lane.b32.xlu1 %v2392_v26, %s1870_s30 }
 0x478   : > { %1244 = vrot.lane.b32.xlu0 %v2402_v39, %s1870_s30  ;;  %1250 = vrot.lane.b32.xlu1 %v2399_v29, %s1870_s30 }
 0x47c   : > { %1252 = vrot.lane.b32.xlu0 %v2405_v22, %s1870_s30  ;;  %1280 = vperm.xlu1 %1803, %v1274_v2   ;;  %s2536_s30 = scalar_lea.hbm %s2596_s11, %s1672_s12 }
 0x480   : > { %1285 = vperm.xlu0 %1802, %v1275_v16   ;;  %1290 = vperm.xlu1 %1803, %v1276_v25  }
 0x484   : > { %1295 = vperm.xlu0 %1802, %v1277_v35   ;;  %1413 = vperm.xlu1 %1803, %v1407_v41  }
 0x488   : > { %1418 = vperm.xlu0 %1802, %v1408_v50   ;;  %1423 = vperm.xlu1 %1803, %v1409_v24  }
 0x48c   : > { %1428 = vperm.xlu0 %1802, %v1410_v32  }
 0x4ce   : > { %v1207_v43 = vpop.permute.xlu1 %1206 }
 0x4d2   : > { %v1209_v45 = vpop.permute.xlu0 %1208  ;;  %v1215_v33 = vpop.permute.xlu1 %1214 }
 0x4d3   : > { %v1222_v40 = vsel %vm560_vm0, %v1207_v43, %v1215_v33  ;;  %v1226_v42 = vsel %vm560_vm0, %v1215_v33, %v1207_v43 }
 0x4d4   : > { %v1230_v54 = vmul.f32 %v1226_v42, %v2043_v30  ;;  %v1231_v36 = vmul.f32 %v1222_v40, %v2045_v31 }
 0x4d6   : > { %v1217_v47 = vpop.permute.xlu0 %1216  ;;  %v1211_v51 = vpop.permute.xlu1 %1210 }
 0x4d7   : > { %v1223_v52 = vsel %vm560_vm0, %v1209_v45, %v1217_v47  ;;  %v1227_v53 = vsel %vm560_vm0, %v1217_v47, %v1209_v45 }
 0x4d8   : > { %v1232_v44 = vmul.f32 %v1227_v53, %v2043_v30  ;;  %v1233_v46 = vmul.f32 %v1223_v52, %v2045_v31 }
 0x4da   : > { %v1735_v55 = vpack.c.bf16 %v1232_v44, %v1230_v54  ;;  %v1213_v56 = vpop.permute.xlu0 %1212  ;;  %v1219_v57 = vpop.permute.xlu1 %1218  ;;  %v1733_v59 = vpack.c.bf16 %v1233_v46, %v1231_v36 }
 0x4db   : > { %v1224_v60 = vsel %vm560_vm0, %v1211_v51, %v1219_v57  ;;  %v1228_v61 = vsel %vm560_vm0, %v1219_v57, %v1211_v51 }
 0x4dc   : > { %1734 = vmatprep.subr.bf16.mxu1 %v1733_v59  ;;  %v1234_v3 = vmul.f32 %v1228_v61, %v2043_v30  ;;  %v1235_v6 = vmul.f32 %v1224_v60, %v2045_v31 }
 0x4dd   : > { %1736 = vmatpush1.bf16.msra.mxu1 %v1735_v55 }
 0x4de   : > { %v1221_v62 = vpop.permute.xlu0 %1220  ;;  %v1239_v63 = vpop.permute.xlu1 %1238 }
 0x4df   : > { %v1225_v0 = vsel %vm560_vm0, %v1213_v56, %v1221_v62  ;;  %v1229_v1 = vsel %vm560_vm0, %v1221_v62, %v1213_v56 }
 0x4e0   : > { %v1236_v7 = vmul.f32 %v1229_v1, %v2043_v30  ;;  %v1237_v9 = vmul.f32 %v1225_v0, %v2045_v31 }
 0x4e2   : > { %v1739_v11 = vpack.c.bf16 %v1236_v7, %v1234_v3  ;;  %v1241_v18 = vpop.permute.xlu0 %1240  ;;  %v1247_v20 = vpop.permute.xlu1 %1246  ;;  %v1737_v28 = vpack.c.bf16 %v1237_v9, %v1235_v6 }
 0x4e3   : > { %v1258_v38 = vsel %vm596_vm1, %v1247_v20, %v1239_v63  ;;  %v1254_v4 = vsel %vm596_vm1, %v1239_v63, %v1247_v20 }
 0x4e4   : > { %1738 = vmatprep.subr.bf16.mxu1 %v1737_v28  ;;  %v1263_v8 = vmul.f32 %v1258_v38, %v2062_v49  ;;  %v1262_v25 = vmul.f32 %v1254_v4, %v2060_v48 }
 0x4e5   : > { %1740 = vmatpush1.bf16.msra.mxu1 %v1739_v11 }
 0x4e6   : > { %v1249_v34 = vpop.permute.xlu0 %1248  ;;  %1742 = vmatprep.subr.bf16.mxu1 %v1741_v21  ;;  %v1243_v37 = vpop.permute.xlu1 %1242 }
 0x4e7   : > { %v1259_v30 = vsel %vm596_vm1, %v1249_v34, %v1241_v18  ;;  %v1255_v31 = vsel %vm596_vm1, %v1241_v18, %v1249_v34 }
 0x4e8   : > { %v1265_v12 = vmul.f32 %v1259_v30, %v2062_v49  ;;  %v1264_v2 = vmul.f32 %v1255_v31, %v2060_v48 }
 0x4e9   : > { %1744 = vmatpush1.bf16.msra.mxu1 %v1743_v17 }
 0x4ea   : > { %v1245_v21 = vpop.permute.xlu0 %1244  ;;  %v1251_v19 = vpop.permute.xlu1 %1250  ;;  %1746 = vmatprep.subr.bf16.mxu1 %v1745_v10  ;;  %v1749_v16 = vpack.c.bf16 %v1265_v12, %v1263_v8  ;;  %v1751_v29 = vpack.c.bf16 %v1264_v2, %v1262_v25 }
 0x4eb   : > { %v1256_v58 = vsel %vm596_vm1, %v1243_v37, %v1251_v19  ;;  %v1260_v5 = vsel %vm596_vm1, %v1251_v19, %v1243_v37 }
 0x4ec   : > { %v1266_v35 = vmul.f32 %v1256_v58, %v2060_v48  ;;  %v1267_v41 = vmul.f32 %v1260_v5, %v2062_v49 }
 0x4ed   : > { %1748 = vmatpush1.bf16.msra.mxu1 %v1747_v27  ;;  %v1271_v27 = vld [vmem:[%s534_s24 + $0x8] sm:$0xff] }
 0x4ee   : > { %v1253_v17 = vpop.permute.xlu0 %1252  ;;  %1750 = vmatprep.subr.bf16.mxu1 %v1749_v16 }
 0x4ef   : > { %v1257_v22 = vsel %vm596_vm1, %v1245_v21, %v1253_v17  ;;  %v1261_v10 = vsel %vm596_vm1, %v1253_v17, %v1245_v21 }
 0x4f0   : > { %v1268_v50 = vmul.f32 %v1257_v22, %v2060_v48  ;;  %v1269_v24 = vmul.f32 %v1261_v10, %v2062_v49  ;;  %v1272_v48 = vld [vmem:[%s534_s24 + $0x10] sm:$0xff]  ;;  %v1273_v49 = vld [vmem:[%s534_s24 + $0x18] sm:$0xff]  ;;  %s1872_s24 = smov [#allocation2]  }
 0x4f1   : > { %1752 = vmatpush1.bf16.msra.mxu1 %v1751_v29  ;;  %s1808_s25 = sshll.u32 %s1872_s24, 4  ;;  %s1809_s25 = int_to_ptr.vmem [resolvable:$false] %s1808_s25 }
 0x4f2   : > { %v1755_v26 = vpack.c.bf16 %v1268_v50, %v1266_v35  ;;  %v1753_v39 = vpack.c.bf16 %v1269_v24, %v1267_v41  ;;  %s1810_s12 = scalar_lea.vmem %s1809_s25, 2048  ;;  %p1811_p0 = scmp.lt.s32.totalorder %s2538_s16, %s1809_s25 }
 0x4f3   : > { %p1812_p1 = scmp.lt.s32.totalorder %s1810_s12, %s1804_s22 }
 0x4f4   : > { %1754 = vmatprep.subr.bf16.mxu1 %v1753_v39 }
 0x4f5   : > { %1756 = vmatpush1.bf16.msra.mxu1 %v1755_v26  ;;  %p1813_p2 = por %p1812_p1, %p1811_p0 }
 0x4f7   : > { %p1814_p3 = pnand %p1813_p2, %p1807_p13 }
 0x4f8   : > { %1654 = vmatmul.mubr.msk.f32.vlgmr.msra.gmra.mrb[8].mxu1 %vm879_vm3, %v1270_v23 }
 0x4f9   : > { %1380 = vmatprep.mubr.f32.mxu1 %v1869_v13 }
 0x4fb   : > { %v1281_v32 = vpop.permute.xlu1 %1280 }
 0x4fc   : > { %1655 = vmatmul.mubr.msk.f32.gmra.mrb[10].mxu1 %vm879_vm3, %v1271_v27 }
 0x4fd   : > { %1386 = vmatprep.mubr.f32.mxu1 %v1869_v13 }
 0x4ff   : > { %v1286_v43 = vpop.permute.xlu0 %1285  ;;  %v1291_v45 = vpop.permute.xlu1 %1290 }
 0x500   : > { %1656 = vmatmul.mubr.msk.f32.gmra.mrb[12].mxu1 %vm879_vm3, %v1272_v48 }
 0x501   : > { %1392 = vmatprep.mubr.f32.mxu1 %v1869_v13 }
 0x503   : > { %v1296_v47 = vpop.permute.xlu0 %1295  ;;  %v1414_v53 = vpop.permute.xlu1 %1413 }
 0x504   : > { %1657 = vmatmul.mubr.msk.f32.gmra.mrb[14].mxu1 %vm879_vm3, %v1273_v49 }
 0x507   : > { %v1419_v59 = vpop.permute.xlu0 %1418  ;;  %v1424_v7 = vpop.permute.xlu1 %1423 }
 0x50b   : > { %v1429_v30 = vpop.permute.xlu0 %1428 }
 0x5cb   : > { %v1376_v33 = vpop.f32.mrb[8].mxu1 }
 0x5cc   : > { %v1377_v40 = vadd.f32 %v1376_v33, %v1281_v32  ;;  %v1378_v42 = vpop.f32.mrb[9].mxu1 }
 0x5cd   : > { %v1379_v51 = vadd.f32 %v1378_v42, %v1281_v32 }
 0x5ce   : > { %v1399_v52 = vmul.f32 %v1377_v40, %v2019_v14 }
 0x5cf   : > { %v1400_v54 = vmul.f32 %v1379_v51, %v2026_v15  ;;  %v1382_v13 = vpop.f32.mrb[10].mxu1 }
 0x5d0   : > { %v1431_v36 = vmul.f32 %v1414_v53, %v1399_v52  ;;  %v1383_v44 = vadd.f32 %v1382_v13, %v1286_v43  ;;  %v1384_v46 = vpop.f32.mrb[11].mxu1 }
 0x5d1   : > { %v1432_v55 = vmul.f32 %v1414_v53, %v1400_v54  ;;  %v1385_v56 = vadd.f32 %v1384_v46, %v1286_v43 }
 0x5d2   : > { %1439 = vst [vmem:[%s2517_s29] sm:$0xff] %v1431_v36  ;;  %v1401_v57 = vmul.f32 %v1383_v44, %v2019_v14 }
 0x5d3   : > { %1440 = vst [vmem:[%s2517_s29 + $0x8] sm:$0xff] %v1432_v55  ;;  %v1402_v60 = vmul.f32 %v1385_v56, %v2026_v15  ;;  %v1388_v61 = vpop.f32.mrb[12].mxu1 }
 0x5d4   : > { %v1433_v62 = vmul.f32 %v1419_v59, %v1401_v57  ;;  %v1389_v63 = vadd.f32 %v1388_v61, %v1291_v45  ;;  %v1390_v0 = vpop.f32.mrb[13].mxu1 }
 0x5d5   : > { %v1434_v1 = vmul.f32 %v1419_v59, %v1402_v60  ;;  %v1391_v3 = vadd.f32 %v1390_v0, %v1291_v45 }
 0x5d6   : > { %1441 = vst [vmem:[%s2517_s29 + $0x10] sm:$0xff] %v1433_v62  ;;  %v1403_v6 = vmul.f32 %v1389_v63, %v2019_v14 }
 0x5d7   : > { %1442 = vst [vmem:[%s2517_s29 + $0x18] sm:$0xff] %v1434_v1  ;;  %v1404_v9 = vmul.f32 %v1391_v3, %v2026_v15  ;;  %v1394_v11 = vpop.f32.mrb[14].mxu1 }
 0x5d8   : > { %v1435_v18 = vmul.f32 %v1424_v7, %v1403_v6  ;;  %v1395_v20 = vadd.f32 %v1394_v11, %v1296_v47  ;;  %v1396_v28 = vpop.f32.mrb[15].mxu1 }
 0x5d9   : > { %v1436_v34 = vmul.f32 %v1424_v7, %v1404_v9  ;;  %v1397_v37 = vadd.f32 %v1396_v28, %v1296_v47 }
 0x5da   : > { %1443 = vst [vmem:[%s2517_s29 + $0x20] sm:$0xff] %v1435_v18  ;;  %v1405_v38 = vmul.f32 %v1395_v20, %v2019_v14 }
 0x5db   : > { %1444 = vst [vmem:[%s2517_s29 + $0x28] sm:$0xff] %v1436_v34  ;;  %v1406_v31 = vmul.f32 %v1397_v37, %v2026_v15 }
 0x5dc   : > { %v1437_v12 = vmul.f32 %v1429_v30, %v1405_v38 }
 0x5dd   : > { %v1438_v4 = vmul.f32 %v1429_v30, %v1406_v31 }
 0x5de   : > { %1445 = vst [vmem:[%s2517_s29 + $0x30] sm:$0xff] %v1437_v12 }
 0x5df   : > { %1446 = vst [vmem:[%s2517_s29 + $0x38] sm:$0xff] %v1438_v4 }
 0x5e0   : > { %1817 = shalt.err (!%p1814_p3)
}
 0x5e1   : > { %s1818_s13 = scalar_lea.hbm %s2536_s30, 1024  ;;  %s1822_s15 = scalar_lea.hbm %s2596_s11, 2048 }
 0x5e2   : > { %p1819_p4 = scmp.ne.s32.totalorder %s2536_s30, %s1818_s13  ;;  %p1823_p9 = scmp.lt.u32.totalorder %s2536_s30, %s2596_s11 }
 0x5e3   : > { %p1824_p10 = scmp.lt.u32.totalorder %s1822_s15, %s1818_s13  ;;  %p1826_p12 = scmp.lt.u32.totalorder %s1818_s13, %s2536_s30 }
 0x5e4   : > { %p1820_p7 = pnand %p1819_p4, %p1973_p5 }
 0x5e5   : > { %p1825_p11 = por %p1824_p10, %p1823_p9 }
 0x5e6   : > { %p1821_p8 = pneg %p1820_p7 }
 0x5e7   : > { %p1827_p13 = por %p1826_p12, %p1825_p11 }
 0x5e9   : > { %p1828_p0 = pnand %p1827_p13, %p1821_p8 }
 0x5eb   : > { %1831 = shalt.err (!%p1828_p0)
}
 0x5ec   : > { %s1873_s22 = smov 256   ;;  %s1874_s12 = smov 16  }
 0x5ed   : > { %1757 = dma.vmem_to_hbm [thread:$0]  (%p1973_p5), %s2538_s16, 1024, %s2536_s30, %s2544_s21, %s1873_s22, %s1873_s22, %s1874_s12  }
 0x5ee PF: > { %p1763_p1 = scmp.ge.s32.totalorder %s1866_s20, 2  ;;  %s1476_s29 = sand.u32 1, %s1854_s17  }
 0x5ef   : > { %s1477_s13 = scalar_lea.sflag [#allocation3], %s1476_s29 }
 0x5f0   : > { %p1760_p2 = pnand %p1763_p1, %p1977_p6 }
 0x5f2   : > { %1849 = dma.done.wait (!%p1760_p2), %s1477_s13, 1024  }
 0x5f3   : > { %1851 = vsyncadd (!%p1760_p2), %s1477_s13, 4294966272  ;;  %p21_p3 = scmp.ge.s32.totalorder %s1960_s23, 4   ;;  %s2599_s17 = smov %s1858_s18 }
 0x5f4   : > { %s2600_s18 = smov %s1862_s19  ;;  %s2601_s19 = smov %s1971_s26 }
 0x5f5   : > { %s2602_s20 = smov %s1960_s23  ;;  %23 = sbr.rel (!%p21_p3) target bundleno = 3 (0x3), region = 123 }
 0x5fc   :  { %1482 = vsyncpa [#allocation3], 1 }
 0x5fd   :  { %1484 = vsyncpa [#allocation3 + $0x1], 1 }

</bundles_post_ra>
